<compile_context>
chip_gen: v7x
topology: tpu7x:2x2x1
jax: 0.10.0
libtpu: 0.0.40
codegen_flags: <defaults>
</compile_context>

<pallas_src>
from functools import partial

import jax
import jax.numpy as jnp
from jax.experimental import pallas as pl
from jax.experimental.pallas import tpu as pltpu


def _rope_kernel(coords_ref, freq_ref, temp_ref, q_ref, k_ref, qo_ref, ko_ref):
    """Blocks:
         coords_ref: (1, 2, H, Wd)      [lat*20, lon*20] lane-expanded (per-b)
         freq_ref:   (1, 2, 1, Wd)      [freq_lon, freq_lat] lane-expanded (per-head)
         temp_ref:   (1, Tb, 1, Wd)     temporal RoPE embedding (per-(b, t-chunk))
         q/k/out:    (1, Tb, 1, H, Wd)  one whole [Tb, H, Wd] slab per grid step
    """
    tb = q_ref.shape[1]
    H = q_ref.shape[3]
    Wd = q_ref.shape[4]
    f32 = jnp.float32

    # ---- per-(b, h) spherical-rotation coefficient planes (built once per step) ----
    lat = coords_ref[0, 0]          # [H, Wd]  (already * 20)
    lon = coords_ref[0, 1]          # [H, Wd]
    f_lon = freq_ref[0, 0]          # [1, Wd]
    f_lat = freq_ref[0, 1]          # [1, Wd]

    ang_a = lon * f_lon             # A = lon * freq_lon
    ang_b = lat * f_lat             # B = lat * freq_lat
    cA = jnp.cos(ang_a)
    sA = jnp.sin(ang_a)
    cB = jnp.cos(ang_b)
    sB = jnp.sin(ang_b)

    # one-hot component-id (l % 3) masks built in-kernel (no aux input needed)
    comp = jax.lax.broadcasted_iota(jnp.int32, (1, Wd), 1) % 3
    s0 = (comp == 0).astype(f32)
    s1 = (comp == 1).astype(f32)
    s2 = (comp == 2).astype(f32)

    cBsA = cB * sA
    sBsA = sB * sA
    cBcA = cB * cA
    sBcA = sB * cA

    # per-lane coefficient of x[l], x[l+1], x[l+2], x[l-1]
    c_self = s0 * cA + s1 * cBcA + s2 * cB          # [H, Wd]
    c_p1 = -(s0 * cBsA + s1 * sBcA)
    c_p2 = s0 * sBsA
    c_m1 = s1 * sA + s2 * sB

    def process_t(t):
        # temporal embedding, broadcast over H hoisted out of rotate_add (used for q & k)
        te_b = jnp.broadcast_to(temp_ref[0, t], (H, Wd))

        def rotate_add(x):
            # neighbours inside each 3-vector block via lane rotations (XLU slots);
            # coefficients are zero wherever a rotation crosses a block/pad boundary.
            xp1 = pltpu.roll(x, shift=Wd - 1, axis=1)   # x[l + 1]
            xp2 = pltpu.roll(x, shift=Wd - 2, axis=1)   # x[l + 2]
            xm1 = pltpu.roll(x, shift=1, axis=1)        # x[l - 1]
            return c_self * x + c_p1 * xp1 + c_p2 * xp2 + c_m1 * xm1 + te_b

        q = q_ref[0, t, 0].astype(f32)
        k = k_ref[0, t, 0].astype(f32)
        qo_ref[0, t, 0] = rotate_add(q).astype(qo_ref.dtype)
        ko_ref[0, t, 0] = rotate_add(k).astype(ko_ref.dtype)

    if tb == 1:
        process_t(0)                 # static index, no dynamic slicing needed
    else:
        @pl.loop(0, tb)
        def _(t):
            process_t(t)


@partial(jax.jit, static_argnames=("t_blk",))
def spatio_temporal_rope(q, k, spatial_pos, time_pos, freq_sph, freq_tmp, t_blk=None):
    """q, k: [B, T, heads, H, W, d_head]; spatial_pos: [B, H, W, 2] (lat, lon);
    time_pos: [B, T]; freq_sph: [heads, d_head//3, 2]; freq_tmp: [d_head//2]."""
    B, T, heads, H, W, d = q.shape
    assert d % 3 == 0 and d % 2 == 0
    f32 = jnp.float32
    Wd = W * d
    Wd_pad = ((Wd + 127) // 128) * 128          # lane-dense stores (no-op when Wd%128==0)
    pad = Wd_pad - Wd

    # ---- per-generation block sizing: HBM-bound => biggest T slab that fits VMEM ----
    try:
        vmem_cap = pltpu.get_tpu_info().vmem_capacity_bytes   # 64 MiB v7x, 128 MiB v5e/v6e
    except Exception:                                          # pragma: no cover
        vmem_cap = 64 * 1024 * 1024                            # conservative fallback
    itemsize = q.dtype.itemsize
    bytes_per_t = H * Wd_pad * itemsize                        # one tensor, one time slice
    if t_blk is None:
        big_budget = int(vmem_cap * 0.6)                       # q,k,qo,ko double-buffered
        max_tb = max(1, big_budget // (8 * bytes_per_t))
        t_blk = max(dd for dd in range(1, T + 1) if T % dd == 0 and dd <= max_tb)
    assert T % t_blk == 0

    # ---- small wrapper-side prep (q/k themselves only get a free trailing merge) ----
    # coords scaled by 20 and lane-expanded so lane l -> spatial column w = l // d
    lat_e = jnp.repeat(spatial_pos[..., 0].astype(f32) * 20.0, d, axis=-1)   # [B, H, Wd]
    lon_e = jnp.repeat(spatial_pos[..., 1].astype(f32) * 20.0, d, axis=-1)
    coords = jnp.stack([lat_e, lon_e], axis=1)                               # [B, 2, H, Wd]

    # per-head frequencies lane-expanded so lane l -> block ((l % d) // 3)
    f_lon_e = jnp.tile(jnp.repeat(freq_sph[..., 0].astype(f32), 3, axis=-1), (1, W))
    f_lat_e = jnp.tile(jnp.repeat(freq_sph[..., 1].astype(f32), 3, axis=-1), (1, W))
    freqs = jnp.stack([f_lon_e, f_lat_e], axis=1)[:, :, None, :]             # [heads,2,1,Wd]

    # temporal RoPE embedding (identity temp_proj since d_time == d_head), lane-expanded
    phase = time_pos[..., None].astype(f32) * freq_tmp[None, None, :].astype(f32)
    temp = jnp.stack([jnp.cos(phase), jnp.sin(phase)], axis=-1).reshape(B, T, d)
    temp_e = jnp.tile(temp, (1, 1, W))[:, :, None, :]                        # [B, T, 1, Wd]

    # q/k: free trailing-dim merge -> lane-dense [.., H, W*d]
    q2 = q.reshape(B, T, heads, H, Wd)
    k2 = k.reshape(B, T, heads, H, Wd)

    if pad:
        # Zero pad lanes: 3-vector blocks never straddle the pad (d % 3 == 0), so no
        # padded value ever contributes to a real output lane; pad outputs are sliced off.
        coords = jnp.pad(coords, ((0, 0), (0, 0), (0, 0), (0, pad)))
        freqs = jnp.pad(freqs, ((0, 0), (0, 0), (0, 0), (0, pad)))
        temp_e = jnp.pad(temp_e, ((0, 0), (0, 0), (0, 0), (0, pad)))
        q2 = jnp.pad(q2, ((0, 0), (0, 0), (0, 0), (0, 0), (0, pad)))
        k2 = jnp.pad(k2, ((0, 0), (0, 0), (0, 0), (0, 0), (0, pad)))

    big_spec = pl.BlockSpec((1, t_blk, 1, H, Wd_pad), lambda b, h, t: (b, t, h, 0, 0))
    coords_spec = pl.BlockSpec((1, 2, H, Wd_pad), lambda b, h, t: (b, 0, 0, 0))
    freq_spec = pl.BlockSpec((1, 2, 1, Wd_pad), lambda b, h, t: (h, 0, 0, 0))
    temp_spec = pl.BlockSpec((1, t_blk, 1, Wd_pad), lambda b, h, t: (b, t, 0, 0))

    out_shape = (jax.ShapeDtypeStruct((B, T, heads, H, Wd_pad), q.dtype),
                 jax.ShapeDtypeStruct((B, T, heads, H, Wd_pad), k.dtype))

    q2o, k2o = pl.pallas_call(
        _rope_kernel,
        grid=(B, heads, T // t_blk),
        in_specs=[coords_spec, freq_spec, temp_spec, big_spec, big_spec],
        out_specs=(big_spec, big_spec),
        out_shape=out_shape,
        compiler_params=pltpu.CompilerParams(
            dimension_semantics=("parallel", "parallel", "arbitrary"),
            # ~48 MiB on v7x (64 MiB physical), ~96 MiB on v5e/v6e (128 MiB physical)
            vmem_limit_bytes=int(vmem_cap * 0.75)),
    )(coords, freqs, temp_e, q2, k2)

    if pad:
        q2o = q2o[..., :Wd]
        k2o = k2o[..., :Wd]
    return (q2o.reshape(B, T, heads, H, W, d),
            k2o.reshape(B, T, heads, H, W, d))


def _ref_forward(q, k, spatial_pos, time_pos, freq_sph, freq_tmp):
    """Pure-JAX reference mirroring the PyTorch module semantics."""
    B, T, heads, H, W, d = q.shape
    nb = d // 3
    lat = spatial_pos[..., 0] * 20.0                                  # [B,H,W]
    lon = spatial_pos[..., 1] * 20.0
    f_lon = freq_sph[..., 0]                                          # [heads,nb]
    f_lat = freq_sph[..., 1]
    A = lon[:, None, :, :, None] * f_lon[None, :, None, None, :]      # [B,heads,H,W,nb]
    Bang = lat[:, None, :, :, None] * f_lat[None, :, None, None, :]
    cA, sA = jnp.cos(A)[:, None], jnp.sin(A)[:, None]                 # add T axis
    cB, sB = jnp.cos(Bang)[:, None], jnp.sin(Bang)[:, None]

    def rot(x):
        xb = x.reshape(B, T, heads, H, W, nb, 3)
        x0 = cA * xb[..., 0] - cB * sA * xb[..., 1] + sB * sA * xb[..., 2]
        x1 = sA * xb[..., 0] + cB * cA * xb[..., 1] - sB * cA * xb[..., 2]
        x2 = sB * xb[..., 1] + cB * xb[..., 2]
        return jnp.stack([x0, x1, x2], axis=-1).reshape(B, T, heads, H, W, d)

    q_sp, k_sp = rot(q), rot(k)
    phase = time_pos[:, :, None] * freq_tmp[None, None, :]
    temp = jnp.stack([jnp.cos(phase), jnp.sin(phase)], axis=-1).reshape(B, T, d)
    temp = temp[:, :, None, None, None, :]
    return q_sp + temp, k_sp + temp


if __name__ == "__main__":
    # d_head multiple of 6 (3 for spherical, 2 for temporal); W*d = 384 (lane-dense)
    B, T, heads, H, W, d_head = 2, 3, 2, 8, 16, 24
    nb = d_head // 3

    key = jax.random.PRNGKey(0)
    k1, k2, k3, k4, k5, k6 = jax.random.split(key, 6)

    # parameters (deterministic synthetic init, std=0.02 like nn.init.normal_)
    freq_sph = 0.02 * jax.random.normal(k1, (heads, nb, 2), jnp.float32)
    freq_tmp = 0.02 * jax.random.normal(k2, (d_head // 2,), jnp.float32)

    # inputs
    q = jax.random.normal(k3, (B, T, heads, H, W, d_head), jnp.float32)
    k_in = jax.random.normal(k4, (B, T, heads, H, W, d_head), jnp.float32)
    lat = (jax.random.uniform(k5, (B, H, W), jnp.float32) - 0.5) * jnp.pi        # [-pi/2, pi/2]
    lon = (jax.random.uniform(k6, (B, H, W), jnp.float32) - 0.5) * 2.0 * jnp.pi  # [-pi, pi]
    spatial_pos = jnp.stack([lat, lon], axis=-1)                                 # [B,H,W,2]
    time_pos = jnp.arange(B * T, dtype=jnp.float32).reshape(B, T)                # [B,T]

    q_ref, k_ref = _ref_forward(q, k_in, spatial_pos, time_pos, freq_sph, freq_tmp)

    # main path: whole-T slab per grid step (auto block sizing)
    q_out, k_out = spatio_temporal_rope(q, k_in, spatial_pos, time_pos, freq_sph, freq_tmp)
    jax.block_until_ready((q_out, k_out))
    assert q_out.shape == (B, T, heads, H, W, d_head)
    assert k_out.shape == (B, T, heads, H, W, d_head)
    assert jnp.allclose(q_out, q_ref, atol=1e-4, rtol=1e-4)
    assert jnp.allclose(k_out, k_ref, atol=1e-4, rtol=1e-4)

    # also exercise the T-chunked path (t_blk < T)
    q_out2, k_out2 = spatio_temporal_rope(q, k_in, spatial_pos, time_pos,
                                          freq_sph, freq_tmp, t_blk=1)
    jax.block_until_ready((q_out2, k_out2))
    assert jnp.allclose(q_out2, q_ref, atol=1e-4, rtol=1e-4)
    assert jnp.allclose(k_out2, k_ref, atol=1e-4, rtol=1e-4)

    print("KERNEL_OK")
</pallas_src>

<mosaic_0001>
module attributes {stable_mosaic.version = 11 : i64} {
  func.func @_rope_kernel(%arg0: i32, %arg1: i32, %arg2: i32, %arg3: memref<1x2x8x384xf32, #tpu.memory_space<vmem>>, %arg4: memref<1x2x1x384xf32, #tpu.memory_space<vmem>>, %arg5: memref<1x3x1x384xf32, #tpu.memory_space<vmem>>, %arg6: memref<1x3x1x8x384xf32, #tpu.memory_space<vmem>>, %arg7: memref<1x3x1x8x384xf32, #tpu.memory_space<vmem>>, %arg8: memref<1x3x1x8x384xf32, #tpu.memory_space<vmem>>, %arg9: memref<1x3x1x8x384xf32, #tpu.memory_space<vmem>>) attributes {dimension_semantics = [#tpu.dimension_semantics<parallel>, #tpu.dimension_semantics<parallel>, #tpu.dimension_semantics<arbitrary>], iteration_bounds = array<i64: 2, 2, 1>, scalar_prefetch = 0 : i64, scratch_operands = 0 : i64, tpu.core_type = #tpu.core_type<tc>, window_params = [{transform_indices = @transform_0, window_bounds = array<i64: 1, 2, 8, 384>}, {transform_indices = @transform_1, window_bounds = array<i64: 1, 2, 1, 384>}, {transform_indices = @transform_2, window_bounds = array<i64: 1, 3, 1, 384>}, {transform_indices = @transform_3, window_bounds = array<i64: 1, 3, 1, 8, 384>}, {transform_indices = @transform_4, window_bounds = array<i64: 1, 3, 1, 8, 384>}, {transform_indices = @transform_5, window_bounds = array<i64: 1, 3, 1, 8, 384>}, {transform_indices = @transform_6, window_bounds = array<i64: 1, 3, 1, 8, 384>}]} {
    %c0 = arith.constant 0 : index
    %c0_0 = arith.constant 0 : index
    %c0_1 = arith.constant 0 : index
    %c0_2 = arith.constant 0 : index
    %0 = vector.load %arg3[%c0, %c0_0, %c0_1, %c0_2] : memref<1x2x8x384xf32, #tpu.memory_space<vmem>>, vector<1x1x8x384xf32>
    %1 = vector.shape_cast %0 : vector<1x1x8x384xf32> to vector<8x384xf32>
    %c0_3 = arith.constant 0 : index
    %c1 = arith.constant 1 : index
    %c0_4 = arith.constant 0 : index
    %c0_5 = arith.constant 0 : index
    %2 = vector.load %arg3[%c0_3, %c1, %c0_4, %c0_5] : memref<1x2x8x384xf32, #tpu.memory_space<vmem>>, vector<1x1x8x384xf32>
    %3 = vector.shape_cast %2 : vector<1x1x8x384xf32> to vector<8x384xf32>
    %c0_6 = arith.constant 0 : index
    %c0_7 = arith.constant 0 : index
    %c0_8 = arith.constant 0 : index
    %c0_9 = arith.constant 0 : index
    %4 = vector.load %arg4[%c0_6, %c0_7, %c0_8, %c0_9] : memref<1x2x1x384xf32, #tpu.memory_space<vmem>>, vector<1x1x1x384xf32>
    %5 = vector.shape_cast %4 : vector<1x1x1x384xf32> to vector<1x384xf32>
    %c0_10 = arith.constant 0 : index
    %c1_11 = arith.constant 1 : index
    %c0_12 = arith.constant 0 : index
    %c0_13 = arith.constant 0 : index
    %6 = vector.load %arg4[%c0_10, %c1_11, %c0_12, %c0_13] : memref<1x2x1x384xf32, #tpu.memory_space<vmem>>, vector<1x1x1x384xf32>
    %7 = vector.shape_cast %6 : vector<1x1x1x384xf32> to vector<1x384xf32>
    %8 = vector.broadcast %5 : vector<1x384xf32> to vector<8x384xf32>
    %9 = arith.mulf %3, %8 : vector<8x384xf32>
    %10 = vector.broadcast %7 : vector<1x384xf32> to vector<8x384xf32>
    %11 = arith.mulf %1, %10 : vector<8x384xf32>
    %12 = math.cos %9 : vector<8x384xf32>
    %13 = math.sin %9 : vector<8x384xf32>
    %14 = math.cos %11 : vector<8x384xf32>
    %15 = math.sin %11 : vector<8x384xf32>
    %16 = tpu.iota {dimensions = array<i32: 1>} : vector<1x384xi32>
    %c3_i32 = arith.constant 3 : i32
    %c0_i32 = arith.constant 0 : i32
    %17 = arith.cmpi eq, %c3_i32, %c0_i32 : i32
    %c1_i32 = arith.constant 1 : i32
    %18 = arith.select %17, %c1_i32, %c3_i32 : i32
    %19 = vector.broadcast %18 : i32 to vector<1x384xi32>
    %20 = arith.remsi %16, %19 : vector<1x384xi32>
    %c0_i32_14 = arith.constant 0 : i32
    %21 = vector.broadcast %c0_i32_14 : i32 to vector<1x384xi32>
    %22 = arith.cmpi ne, %20, %21 : vector<1x384xi32>
    %c0_i32_15 = arith.constant 0 : i32
    %23 = vector.broadcast %c0_i32_15 : i32 to vector<1x384xi32>
    %24 = arith.cmpi slt, %20, %23 : vector<1x384xi32>
    %c0_i32_16 = arith.constant 0 : i32
    %25 = arith.cmpi slt, %18, %c0_i32_16 : i32
    %26 = vector.broadcast %25 : i1 to vector<1x384xi1>
    %27 = vector.broadcast %26 : vector<1x384xi1> to vector<1x384xi1>
    %28 = arith.xori %24, %27 : vector<1x384xi1>
    %29 = arith.andi %28, %22 : vector<1x384xi1>
    %30 = vector.broadcast %18 : i32 to vector<1x384xi32>
    %31 = arith.addi %20, %30 : vector<1x384xi32>
    %32 = arith.select %29, %31, %20 : vector<1x384xi1>, vector<1x384xi32>
    %c0_i32_17 = arith.constant 0 : i32
    %33 = vector.broadcast %c0_i32_17 : i32 to vector<1x384xi32>
    %34 = arith.cmpi eq, %32, %33 : vector<1x384xi32>
    %35 = arith.extui %34 : vector<1x384xi1> to vector<1x384xi32>
    %36 = arith.sitofp %35 : vector<1x384xi32> to vector<1x384xf32>
    %c1_i32_18 = arith.constant 1 : i32
    %37 = vector.broadcast %c1_i32_18 : i32 to vector<1x384xi32>
    %38 = arith.cmpi eq, %32, %37 : vector<1x384xi32>
    %39 = arith.extui %38 : vector<1x384xi1> to vector<1x384xi32>
    %40 = arith.sitofp %39 : vector<1x384xi32> to vector<1x384xf32>
    %c2_i32 = arith.constant 2 : i32
    %41 = vector.broadcast %c2_i32 : i32 to vector<1x384xi32>
    %42 = arith.cmpi eq, %32, %41 : vector<1x384xi32>
    %43 = arith.extui %42 : vector<1x384xi1> to vector<1x384xi32>
    %44 = arith.sitofp %43 : vector<1x384xi32> to vector<1x384xf32>
    %45 = arith.mulf %14, %13 : vector<8x384xf32>
    %46 = arith.mulf %15, %13 : vector<8x384xf32>
    %47 = arith.mulf %14, %12 : vector<8x384xf32>
    %48 = arith.mulf %15, %12 : vector<8x384xf32>
    %49 = vector.broadcast %36 : vector<1x384xf32> to vector<8x384xf32>
    %50 = arith.mulf %49, %12 : vector<8x384xf32>
    %51 = vector.broadcast %40 : vector<1x384xf32> to vector<8x384xf32>
    %52 = arith.mulf %51, %47 : vector<8x384xf32>
    %53 = arith.addf %50, %52 : vector<8x384xf32>
    %54 = vector.broadcast %44 : vector<1x384xf32> to vector<8x384xf32>
    %55 = arith.mulf %54, %14 : vector<8x384xf32>
    %56 = arith.addf %53, %55 : vector<8x384xf32>
    %57 = vector.broadcast %36 : vector<1x384xf32> to vector<8x384xf32>
    %58 = arith.mulf %57, %45 : vector<8x384xf32>
    %59 = vector.broadcast %40 : vector<1x384xf32> to vector<8x384xf32>
    %60 = arith.mulf %59, %48 : vector<8x384xf32>
    %61 = arith.addf %58, %60 : vector<8x384xf32>
    %cst = arith.constant 0.000000e+00 : f32
    %62 = vector.broadcast %cst : f32 to vector<8x384xf32>
    %63 = arith.subf %62, %61 : vector<8x384xf32>
    %64 = vector.broadcast %36 : vector<1x384xf32> to vector<8x384xf32>
    %65 = arith.mulf %64, %46 : vector<8x384xf32>
    %66 = vector.broadcast %40 : vector<1x384xf32> to vector<8x384xf32>
    %67 = arith.mulf %66, %13 : vector<8x384xf32>
    %68 = vector.broadcast %44 : vector<1x384xf32> to vector<8x384xf32>
    %69 = arith.mulf %68, %15 : vector<8x384xf32>
    %70 = arith.addf %67, %69 : vector<8x384xf32>
    %c0_i32_19 = arith.constant 0 : i32
    %c3_i32_20 = arith.constant 3 : i32
    %71 = arith.addi %c0_i32_19, %c3_i32_20 : i32
    %c1_i32_21 = arith.constant 1 : i32
    scf.for %arg10 = %c0_i32_19 to %71 step %c1_i32_21  : i32 {
      %c1_i32_23 = arith.constant 1 : i32
      %72 = arith.muli %arg10, %c1_i32_23 : i32
      %c0_i32_24 = arith.constant 0 : i32
      %73 = arith.addi %c0_i32_24, %72 : i32
      %c0_25 = arith.constant 0 : index
      %74 = arith.index_cast %73 : i32 to index
      %c0_26 = arith.constant 0 : index
      %c0_27 = arith.constant 0 : index
      %75 = vector.load %arg5[%c0_25, %74, %c0_26, %c0_27] : memref<1x3x1x384xf32, #tpu.memory_space<vmem>>, vector<1x1x1x384xf32>
      %76 = vector.shape_cast %75 : vector<1x1x1x384xf32> to vector<1x384xf32>
      %77 = vector.shape_cast %76 : vector<1x384xf32> to vector<1x384xf32>
      %78 = vector.broadcast %77 : vector<1x384xf32> to vector<8x384xf32>
      %c0_28 = arith.constant 0 : index
      %79 = arith.index_cast %73 : i32 to index
      %c0_29 = arith.constant 0 : index
      %c0_30 = arith.constant 0 : index
      %c0_31 = arith.constant 0 : index
      %80 = vector.load %arg6[%c0_28, %79, %c0_29, %c0_30, %c0_31] : memref<1x3x1x8x384xf32, #tpu.memory_space<vmem>>, vector<1x1x1x8x384xf32>
      %81 = vector.shape_cast %80 : vector<1x1x1x8x384xf32> to vector<8x384xf32>
      %c0_32 = arith.constant 0 : index
      %82 = arith.index_cast %73 : i32 to index
      %c0_33 = arith.constant 0 : index
      %c0_34 = arith.constant 0 : index
      %c0_35 = arith.constant 0 : index
      %83 = vector.load %arg7[%c0_32, %82, %c0_33, %c0_34, %c0_35] : memref<1x3x1x8x384xf32, #tpu.memory_space<vmem>>, vector<1x1x1x8x384xf32>
      %84 = vector.shape_cast %83 : vector<1x1x1x8x384xf32> to vector<8x384xf32>
      %c383_i32 = arith.constant 383 : i32
      %85 = tpu.dynamic_rotate %81 by %c383_i32 dim 1 : vector<8x384xf32>, i32 -> vector<8x384xf32>
      %c382_i32 = arith.constant 382 : i32
      %86 = tpu.dynamic_rotate %81 by %c382_i32 dim 1 : vector<8x384xf32>, i32 -> vector<8x384xf32>
      %c1_i32_36 = arith.constant 1 : i32
      %87 = tpu.dynamic_rotate %81 by %c1_i32_36 dim 1 : vector<8x384xf32>, i32 -> vector<8x384xf32>
      %88 = arith.mulf %56, %81 : vector<8x384xf32>
      %89 = arith.mulf %63, %85 : vector<8x384xf32>
      %90 = arith.addf %88, %89 : vector<8x384xf32>
      %91 = arith.mulf %65, %86 : vector<8x384xf32>
      %92 = arith.addf %90, %91 : vector<8x384xf32>
      %93 = arith.mulf %70, %87 : vector<8x384xf32>
      %94 = arith.addf %92, %93 : vector<8x384xf32>
      %95 = arith.addf %94, %78 : vector<8x384xf32>
      %c0_37 = arith.constant 0 : index
      %96 = arith.index_cast %73 : i32 to index
      %c0_38 = arith.constant 0 : index
      %c0_39 = arith.constant 0 : index
      %c0_40 = arith.constant 0 : index
      %97 = vector.load %arg8[%c0_37, %96, %c0_38, %c0_39, %c0_40] : memref<1x3x1x8x384xf32, #tpu.memory_space<vmem>>, vector<1x1x1x8x384xf32>
      %98 = vector.shape_cast %97 : vector<1x1x1x8x384xf32> to vector<8x384xf32>
      %99 = vector.shape_cast %95 : vector<8x384xf32> to vector<1x1x1x8x384xf32>
      tpu.vector_store %arg8[%c0_37, %96, %c0_38, %c0_39, %c0_40], %99 {strides = array<i32>} : memref<1x3x1x8x384xf32, #tpu.memory_space<vmem>>, vector<1x1x1x8x384xf32>,
      %c383_i32_41 = arith.constant 383 : i32
      %100 = tpu.dynamic_rotate %84 by %c383_i32_41 dim 1 : vector<8x384xf32>, i32 -> vector<8x384xf32>
      %c382_i32_42 = arith.constant 382 : i32
      %101 = tpu.dynamic_rotate %84 by %c382_i32_42 dim 1 : vector<8x384xf32>, i32 -> vector<8x384xf32>
      %c1_i32_43 = arith.constant 1 : i32
      %102 = tpu.dynamic_rotate %84 by %c1_i32_43 dim 1 : vector<8x384xf32>, i32 -> vector<8x384xf32>
      %103 = arith.mulf %56, %84 : vector<8x384xf32>
      %104 = arith.mulf %63, %100 : vector<8x384xf32>
      %105 = arith.addf %103, %104 : vector<8x384xf32>
      %106 = arith.mulf %65, %101 : vector<8x384xf32>
      %107 = arith.addf %105, %106 : vector<8x384xf32>
      %108 = arith.mulf %70, %102 : vector<8x384xf32>
      %109 = arith.addf %107, %108 : vector<8x384xf32>
      %110 = arith.addf %109, %78 : vector<8x384xf32>
      %c0_44 = arith.constant 0 : index
      %111 = arith.index_cast %73 : i32 to index
      %c0_45 = arith.constant 0 : index
      %c0_46 = arith.constant 0 : index
      %c0_47 = arith.constant 0 : index
      %112 = vector.load %arg9[%c0_44, %111, %c0_45, %c0_46, %c0_47] : memref<1x3x1x8x384xf32, #tpu.memory_space<vmem>>, vector<1x1x1x8x384xf32>
      %113 = vector.shape_cast %112 : vector<1x1x1x8x384xf32> to vector<8x384xf32>
      %114 = vector.shape_cast %110 : vector<8x384xf32> to vector<1x1x1x8x384xf32>
      tpu.vector_store %arg9[%c0_44, %111, %c0_45, %c0_46, %c0_47], %114 {strides = array<i32>} : memref<1x3x1x8x384xf32, #tpu.memory_space<vmem>>, vector<1x1x1x8x384xf32>,
    }
    %c3_i32_22 = arith.constant 3 : i32
    return
  }
  func.func @transform_0(%arg0: i32, %arg1: i32, %arg2: i32) -> (i32, i32, i32, i32) {
    %c0_i32 = arith.constant 0 : i32
    %c0_i32_0 = arith.constant 0 : i32
    %c0_i32_1 = arith.constant 0 : i32
    %c0_i32_2 = arith.constant 0 : i32
    return %arg0, %c0_i32, %c0_i32_0, %c0_i32_1 : i32, i32, i32, i32
  }
  func.func @transform_1(%arg0: i32, %arg1: i32, %arg2: i32) -> (i32, i32, i32, i32) {
    %c0_i32 = arith.constant 0 : i32
    %c0_i32_0 = arith.constant 0 : i32
    %c0_i32_1 = arith.constant 0 : i32
    %c0_i32_2 = arith.constant 0 : i32
    return %arg1, %c0_i32, %c0_i32_0, %c0_i32_1 : i32, i32, i32, i32
  }
  func.func @transform_2(%arg0: i32, %arg1: i32, %arg2: i32) -> (i32, i32, i32, i32) {
    %c0_i32 = arith.constant 0 : i32
    %c0_i32_0 = arith.constant 0 : i32
    %c0_i32_1 = arith.constant 0 : i32
    return %arg0, %arg2, %c0_i32, %c0_i32_0 : i32, i32, i32, i32
  }
  func.func @transform_3(%arg0: i32, %arg1: i32, %arg2: i32) -> (i32, i32, i32, i32, i32) {
    %c0_i32 = arith.constant 0 : i32
    %c0_i32_0 = arith.constant 0 : i32
    %c0_i32_1 = arith.constant 0 : i32
    return %arg0, %arg2, %arg1, %c0_i32, %c0_i32_0 : i32, i32, i32, i32, i32
  }
  func.func @transform_4(%arg0: i32, %arg1: i32, %arg2: i32) -> (i32, i32, i32, i32, i32) {
    %c0_i32 = arith.constant 0 : i32
    %c0_i32_0 = arith.constant 0 : i32
    %c0_i32_1 = arith.constant 0 : i32
    return %arg0, %arg2, %arg1, %c0_i32, %c0_i32_0 : i32, i32, i32, i32, i32
  }
  func.func @transform_5(%arg0: i32, %arg1: i32, %arg2: i32) -> (i32, i32, i32, i32, i32) {
    %c0_i32 = arith.constant 0 : i32
    %c0_i32_0 = arith.constant 0 : i32
    %c0_i32_1 = arith.constant 0 : i32
    return %arg0, %arg2, %arg1, %c0_i32, %c0_i32_0 : i32, i32, i32, i32, i32
  }
  func.func @transform_6(%arg0: i32, %arg1: i32, %arg2: i32) -> (i32, i32, i32, i32, i32) {
    %c0_i32 = arith.constant 0 : i32
    %c0_i32_0 = arith.constant 0 : i32
    %c0_i32_1 = arith.constant 0 : i32
    return %arg0, %arg2, %arg1, %c0_i32, %c0_i32_0 : i32, i32, i32, i32, i32
  }
}

</mosaic_0001>

<bundles_post_ra>
// kernel: spatio_temporal_rope.1
= control target key start
LH: loop header
LB: loop body
LE: loop exit
PB: predicated region body
PF: predicated region fallthrough
CT: control target
= control target key end

     0   :  { %s2659_s21 = smov 0   ;;  %s2661_s22 = smov 0   ;;  %s3666_s0 = inlined_call_operand.vmem [shape: f32[2,2,8,384], index: 0, kind: input, shape index: {}]   ;;  %s3667_s1 = inlined_call_operand.vmem [shape: f32[2,2,1,384], index: 1, kind: input, shape index: {}]   ;;  %s3668_s2 = inlined_call_operand.vmem [shape: f32[2,3,1,384], index: 2, kind: input, shape index: {}]   ;;  %s3669_s3 = inlined_call_operand.vmem [shape: f32[2,3,2,8,384], index: 3, kind: input, shape index: {}]   ;;  %s3670_s4 = inlined_call_operand.vmem [shape: f32[2,3,2,8,384], index: 4, kind: input, shape index: {}]   ;;  %s3671_s5 = inlined_call_operand.vmem [shape: f32[2,3,2,8,384], index: 5, kind: output, shape index: {0}]   ;;  %s3672_s6 = inlined_call_operand.vmem [shape: f32[2,3,2,8,384], index: 6, kind: output, shape index: {1}]  }
   0x1   :  { %s2663_s23 = smov 0   ;;  %s2665_s24 = smov 0  }
   0x2   :  { %s2667_s25 = smov 0   ;;  %s2669_s26 = smov 0  }
   0x3   :  { %s2671_s27 = smov 0  }
   0x4 LB: > { %s32_s28 = sadd.s32 1, %s2600_s25  ;;  %s36_s29 = sadd.s32 1, %s2604_s26  ;;  %s2608_s27 = sphi %s2671_s27, %s17_s27   ;;  %s2604_s26 = sphi %s2669_s26, %s3694_s26   ;;  %s2600_s25 = sphi %s2667_s25, %s3693_s25   ;;  %s2596_s24 = sphi %s2665_s24, %s3692_s24   ;;  %s2592_s23 = sphi %s2663_s23, %s3691_s23   ;;  %s2588_s22 = sphi %s2661_s22, %s3690_s22   ;;  %s2584_s21 = sphi %s2659_s21, %s3689_s21  }
   0x5   : > { %p34_p0 = scmp.ge.s32.totalorder %s32_s28, 2  ;;  %s2327_s30 = sadd.s32 4294967295, %s2608_s27  }
   0x6   : > { %p134_p1 = scmp.ne.s32.totalorder %s2588_s22, %s2584_s21  ;;  %p135_p2 = scmp.eq.s32.totalorder %s2608_s27, 0 }
   0x7   : > { %s3696_s28 = smov (%p34_p0, %s32_s28), 0  ;;  %s3698_s29 = smov (!%p34_p0, %s36_s29), %s2604_s26 }
   0x8   : > { %p38_p3 = scmp.ge.s32.totalorder %s3698_s29, 2  ;;  %p198_p4 = scmp.eq.s32.totalorder %s2327_s30, 3 }
   0x9   : > { %s123_s7 = ssub.s32 %s2600_s25, %s3696_s28  ;;  %p2705_p5 = por %p135_p2, %p134_p1 }
   0xa   : > { %s3700_s29 = smov (%p38_p3, %s3698_s29), 0  ;;  %p2711_p6 = por %p198_p4, %p134_p1 }
   0xb   : > { %s120_s10 = ssub.s32 %s2604_s26, %s3700_s29  ;;  %s127_s12 = sadd.s32 1, %s2588_s22 }
   0xc   : > { %s124_s11 = sor.u32 %s123_s7, %s120_s10  ;;  %p2330_p8 = scmp.ge.s32.totalorder %s2608_s27, 4 }
   0xd   : > { %p125_p7 = scmp.eq.s32.totalorder %s124_s11, 0 }
   0xe   : > { %250 = sbr.rel (%p2330_p8) target bundleno = 49 (0x31), region = 16 }
   0xf   : > { %s2719_s13 = scalar_select %p125_p7, %s2588_s22, %s127_s12  }
  0x15   : > { %281 = sbr.rel (!%p2705_p5) target bundleno = 35 (0x23), region = 32  ;;  %s283_s14 = sand.u32 (%p2705_p5), 1, %s2588_s22  }
  0x16   : > { %s2409_s15 = smul.u32 (%p2705_p5), 3, %s2600_s25 }
  0x17   : > { %s2408_s16 = smul.u32 (%p2705_p5), 72, %s283_s14 }
  0x18   : > { %s2410_s17 = smul.u32 (%p2705_p5), 18, %s2604_s26 }
  0x19   : > { %s285_s10 = scalar_lea.vmem (%p2705_p5), [#allocation2], %s2408_s16 }
  0x1a   : > { %s291_s18 = sadd.s32 (%p2705_p5), %s2410_s17, %s2409_s15 }
  0x1b   : > { %s2331_s19 = sshll.u32 (%p2705_p5), %s291_s18, 3 }
  0x1c   : > { %s293_s7 = scalar_lea.vmem %s3669_s3, %s2331_s19 }
  0x1d   : > { %v306_v0 = vld [vmem:[%s293_s7] sm:$0xff]  ;;  %v308_v1 = vld [vmem:[%s293_s7 + $0x8] sm:$0xff]  ;;  %v310_v2 = vld [vmem:[%s293_s7 + $0x10] sm:$0xff] }
  0x1e   : > { %307 = vst [vmem:[%s285_s10] sm:$0xff] %v306_v0  ;;  %309 = vst [vmem:[%s285_s10 + $0x8] sm:$0xff] %v308_v1  ;;  %v312_v3 = vld [vmem:[%s293_s7 + $0x30] sm:$0xff]  ;;  %v314_v4 = vld [vmem:[%s293_s7 + $0x38] sm:$0xff] }
  0x1f   : > { %311 = vst [vmem:[%s285_s10 + $0x10] sm:$0xff] %v310_v2  ;;  %v316_v5 = vld [vmem:[%s293_s7 + $0x40] sm:$0xff]  ;;  %313 = vst [vmem:[%s285_s10 + $0x18] sm:$0xff] %v312_v3  ;;  %v320_v7 = vld [vmem:[%s293_s7 + $0x68] sm:$0xff] }
  0x20   : > { %315 = vst [vmem:[%s285_s10 + $0x20] sm:$0xff] %v314_v4  ;;  %317 = vst [vmem:[%s285_s10 + $0x28] sm:$0xff] %v316_v5  ;;  %v318_v6 = vld [vmem:[%s293_s7 + $0x60] sm:$0xff]  ;;  %v322_v8 = vld [vmem:[%s293_s7 + $0x70] sm:$0xff] }
  0x21   : > { %319 = vst [vmem:[%s285_s10 + $0x30] sm:$0xff] %v318_v6  ;;  %321 = vst [vmem:[%s285_s10 + $0x38] sm:$0xff] %v320_v7 }
  0x22   : > { %323 = vst [vmem:[%s285_s10 + $0x40] sm:$0xff] %v322_v8 }
  0x23 PF: > { %329 = sbr.rel (!%p2705_p5) target bundleno = 49 (0x31), region = 55  ;;  %s331_s11 = sand.u32 (%p2705_p5), 1, %s2588_s22  }
  0x24   : > { %s2412_s12 = smul.u32 (%p2705_p5), 3, %s2600_s25 }
  0x25   : > { %s2411_s14 = smul.u32 (%p2705_p5), 72, %s331_s11 }
  0x26   : > { %s2413_s15 = smul.u32 (%p2705_p5), 18, %s2604_s26 }
  0x27   : > { %s333_s30 = scalar_lea.vmem (%p2705_p5), [#allocation3], %s2411_s14 }
  0x28   : > { %s339_s16 = sadd.s32 (%p2705_p5), %s2413_s15, %s2412_s12 }
  0x29   : > { %s2332_s17 = sshll.u32 (%p2705_p5), %s339_s16, 3 }
  0x2a   : > { %s341_s20 = scalar_lea.vmem %s3670_s4, %s2332_s17 }
  0x2b   : > { %v354_v9 = vld [vmem:[%s341_s20] sm:$0xff]  ;;  %v356_v10 = vld [vmem:[%s341_s20 + $0x8] sm:$0xff]  ;;  %v358_v11 = vld [vmem:[%s341_s20 + $0x10] sm:$0xff] }
  0x2c   : > { %355 = vst [vmem:[%s333_s30] sm:$0xff] %v354_v9  ;;  %357 = vst [vmem:[%s333_s30 + $0x8] sm:$0xff] %v356_v10  ;;  %v360_v12 = vld [vmem:[%s341_s20 + $0x30] sm:$0xff]  ;;  %v362_v13 = vld [vmem:[%s341_s20 + $0x38] sm:$0xff] }
  0x2d   : > { %359 = vst [vmem:[%s333_s30 + $0x10] sm:$0xff] %v358_v11  ;;  %v364_v14 = vld [vmem:[%s341_s20 + $0x40] sm:$0xff]  ;;  %361 = vst [vmem:[%s333_s30 + $0x18] sm:$0xff] %v360_v12  ;;  %v368_v16 = vld [vmem:[%s341_s20 + $0x68] sm:$0xff] }
  0x2e   : > { %363 = vst [vmem:[%s333_s30 + $0x20] sm:$0xff] %v362_v13  ;;  %365 = vst [vmem:[%s333_s30 + $0x28] sm:$0xff] %v364_v14  ;;  %v366_v15 = vld [vmem:[%s341_s20 + $0x60] sm:$0xff]  ;;  %v370_v17 = vld [vmem:[%s341_s20 + $0x70] sm:$0xff] }
  0x2f   : > { %367 = vst [vmem:[%s333_s30 + $0x30] sm:$0xff] %v366_v15  ;;  %369 = vst [vmem:[%s333_s30 + $0x38] sm:$0xff] %v368_v16 }
  0x30   : > { %371 = vst [vmem:[%s333_s30 + $0x40] sm:$0xff] %v370_v17 }
  0x31 PF: > { %p2333_p9 = scmp.ge.s32.totalorder %s2608_s27, 1  ;;  %p376_p10 = scmp.lt.s32.totalorder %s2608_s27, 5 }
  0x33   : > { %p377_p11 = pnand %p2333_p9, %p376_p10 }
  0x34   : > { %s383_s8 = sand.u32 (!%p377_p11), 1, %s2584_s21   ;;  %p444_p12 = scmp.lt.s32.totalorder (!%p377_p11), %s2596_s24, 1  ;;  %v478_v18 = vlaneseq (!%p377_p11)  ;;  %v2614_v59 = vmov (!%p377_p11), 683565275   ;;  %v2615_v61 = vmov (!%p377_p11), 2475754826  }
  0x35   : > { %380 = sbr.rel (%p377_p11) target bundleno = 452 (0x1c4), region = 78  ;;  %p449_p13 = scmp.lt.s32.totalorder (!%p377_p11), %s2592_s23, 1  ;;  %v2616_v63 = vmov (!%p377_p11), 2131351028   ;;  %v2617_v1 = vmov (!%p377_p11), 2102212464  }
  0x36   : > { %s2742_s7 = smul.u32 (!%p377_p11), 72, %s383_s8  ;;  %v479_v19 = vshrl.u32 (!%p377_p11), %v478_v18, 7  ;;  %v2618_v3 = vmov (!%p377_p11), 920167782   ;;  %v2619_v11 = vmov (!%p377_p11), 1326507024  }
  0x37   : > { %s3514_s16 = smov (!%p377_p11), 0  }
  0x38   : > { %v2753_v20 = vsub.s32 (!%p377_p11), 0, %v479_v19  ;;  %v2755_v21 = vsub.s32 (!%p377_p11), 1, %v479_v19  ;;  %v2757_v22 = vsub.s32 (!%p377_p11), 2, %v479_v19  ;;  %s3512_s15 = scalar_lea.vmem (!%p377_p11), [#allocation5], %s2742_s7 }
  0x3c   : > { %s445_s10 = scalar_select %p444_p12, %s2596_s24, 1 }
  0x3d   : > { %s450_s12 = scalar_select %p449_p13, %s2592_s23, 1 }
  0x3e   : > { %s2415_s11 = smul.u32 48, %s445_s10 }
  0x3f   : > { %s2417_s14 = smul.u32 9, %s445_s10 }
  0x40   : > { %s2751_s17 = scalar_lea.vmem %s3666_s0, %s2415_s11  ;;  %s2416_s21 = smul.u32 6, %s450_s12 }
  0x41   : > { %s2762_s20 = scalar_lea.vmem %s3668_s2, %s2417_s14  ;;  %v2335_v23 = vld [vmem:[%s2751_s17 + $0x18] sm:$0xff]  ;;  %v2336_v24 = vld [vmem:[%s2751_s17 + $0x20] sm:$0xff]  ;;  %v2337_v26 = vld [vmem:[%s2751_s17 + $0x28] sm:$0xff]  ;;  %s385_s11 = scalar_lea.vmem [#allocation2], %s2742_s7 }
  0x42   : > { %s2767_s10 = scalar_lea.vmem %s3667_s1, %s2416_s21  ;;  %s392_s12 = scalar_lea.vmem [#allocation3], %s2742_s7 }
  0x43   : > { %v474_v25 = vld [vmem:[%s2767_s10] sm:$0x7]  ;;  %s3509_s14 = scalar_lea.vmem [#allocation4], %s2742_s7 }
  0x44   : > { %v481_v27 = vrot.slane %v474_v25, %v2753_v20  ;;  %v485_v28 = vrot.slane %v474_v25, %v2755_v21  ;;  %v489_v29 = vrot.slane %v474_v25, %v2757_v22 }
  0x46   : > { %v2776_v30 = vmul.f32 %v2335_v23, %v481_v27  ;;  %v2778_v31 = vmul.f32 %v2336_v24, %v485_v28  ;;  %v2780_v32 = vmul.f32 %v2337_v26, %v489_v29 }
  0x48   : > { %v515_v33 = vand.u32 2147483647, %v2776_v30  ;;  %v518_v34 = vand.u32 2139095040, %v2776_v30  ;;  %v618_v35 = vand.u32 2147483647, %v2778_v31  ;;  %v621_v36 = vand.u32 2139095040, %v2778_v31 }
  0x49   : > { %v724_v41 = vand.u32 2139095040, %v2780_v32 }
  0x4a   : > { %v519_v37 = vshrl.u32 %v518_v34, 23  ;;  %v522_v38 = vand.u32 8388607, %v515_v33  ;;  %v622_v39 = vshrl.u32 %v621_v36, 23  ;;  %v625_v40 = vand.u32 8388607, %v618_v35 }
  0x4b   : > { %v725_v44 = vshrl.u32 %v724_v41, 23 }
  0x4c   : > { %v2339_v42 = vadd.s32 4294967169, %v519_v37  ;;  %v2343_v43 = vadd.s32 4294967169, %v622_v39  ;;  %v523_v46 = vor.u32 8388608, %v522_v38  ;;  %v626_v47 = vor.u32 8388608, %v625_v40 }
  0x4d   : > { %v2347_v49 = vadd.s32 4294967169, %v725_v44 }
  0x4e   : > { %v525_v45 = vadd.s32 1, %v2339_v42  ;;  %v628_v48 = vadd.s32 1, %v2343_v43  ;;  %v2791_v54 = vshll.u32 %v523_v46, 8  ;;  %v2793_v56 = vshll.u32 %v626_v47, 8 }
  0x4f   : > { %v2795_v57 = vadd.s32 1, %v2347_v49 }
  0x50   : > { %vm526_vm0 = vcmp.gt.s32.totalorder %v525_v45, 0  ;;  %vm629_vm1 = vcmp.gt.s32.totalorder %v628_v48, 0 }
  0x51   : > { %v527_v50 = vsel %vm526_vm0, %v525_v45, 0  ;;  %v630_v53 = vsel %vm629_vm1, %v628_v48, 0  ;;  %vm732_vm6 = vcmp.gt.s32.totalorder %v2795_v57, 0 }
  0x52   : > { %v528_v51 = vshrl.u32 %v527_v50, 5  ;;  %v529_v52 = vand.u32 31, %v527_v50  ;;  %v632_v55 = vand.u32 31, %v630_v53  ;;  %v2802_v5 = vshrl.u32 %v630_v53, 5 }
  0x54   : > { %v530_v58 = vsub.s32 32, %v529_v52  ;;  %v532_v60 = vshll.u32 %v2614_v59, %v529_v52  ;;  %v535_v62 = vshll.u32 %v2615_v61, %v529_v52  ;;  %v538_v0 = vshll.u32 %v2616_v63, %v529_v52 }
  0x55   : > { %v541_v2 = vshll.u32 %v2617_v1, %v529_v52  ;;  %v544_v4 = vshll.u32 %v2618_v3, %v529_v52  ;;  %vm547_vm2 = vcmp.lt.s32.totalorder %v528_v51, 1  ;;  %vm548_vm3 = vcmp.lt.s32.totalorder %v528_v51, 2 }
  0x56   : > { %v531_v6 = vshrl.u32 %v2614_v59, %v530_v58  ;;  %v533_v7 = vshrl.u32 %v2615_v61, %v530_v58  ;;  %v536_v8 = vshrl.u32 %v2616_v63, %v530_v58  ;;  %v539_v9 = vshrl.u32 %v2617_v1, %v530_v58 }
  0x57   : > { %v542_v10 = vshrl.u32 %v2618_v3, %v530_v58  ;;  %v545_v12 = vshrl.u32 %v2619_v11, %v530_v58  ;;  %vm550_vm4 = vcmp.lt.s32.totalorder %v528_v51, 4  ;;  %v633_v16 = vsub.s32 32, %v632_v55 }
  0x58   : > { %v534_v13 = vor.u32 %v533_v7, %v532_v60  ;;  %v537_v14 = vor.u32 %v536_v8, %v535_v62  ;;  %v540_v15 = vor.u32 %v539_v9, %v538_v0  ;;  %vm549_vm5 = vcmp.lt.s32.totalorder %v528_v51, 3 }
  0x59   : > { %v543_v17 = vor.u32 %v542_v10, %v541_v2  ;;  %v546_v19 = vor.u32 %v545_v12, %v544_v4  ;;  %v635_v23 = vshll.u32 %v2614_v59, %v632_v55  ;;  %v638_v36 = vshll.u32 %v2615_v61, %v632_v55 }
  0x5a   : > { %v551_v24 = vsel %vm547_vm2, %v531_v6, %v534_v13  ;;  %v552_v25 = vsel %vm550_vm4, %v540_v15, 2102212464  ;;  %v555_v26 = vsel %vm547_vm2, %v534_v13, %v537_v14  ;;  %v559_v27 = vsel %vm547_vm2, %v537_v14, %v540_v15  ;;  %v2847_v13 = vld [vmem:[%s2767_s10 + $0x3] sm:$0x7] }
  0x5b   : > { %v553_v28 = vsel %vm549_vm5, %v537_v14, %v552_v25  ;;  %v556_v29 = vsel %vm550_vm4, %v543_v17, 920167782  ;;  %v560_v34 = vsel %vm550_vm4, %v546_v19, 1326507024  ;;  %v634_v39 = vshrl.u32 %v2614_v59, %v633_v16 }
  0x5c   : > { %v557_v37 = vsel %vm549_vm5, %v540_v15, %v556_v29  ;;  %v561_v38 = vsel %vm549_vm5, %v543_v17, %v560_v34  ;;  %v636_v40 = vshrl.u32 %v2615_v61, %v633_v16  ;;  %v554_v41 = vsel %vm548_vm3, %v551_v24, %v553_v28 }
  0x5d   : > { %v558_v42 = vsel %vm548_vm3, %v555_v26, %v557_v37  ;;  %v562_v43 = vsel %vm548_vm3, %v559_v27, %v561_v38  ;;  %v639_v44 = vshrl.u32 %v2616_v63, %v633_v16  ;;  %v641_v52 = vshll.u32 %v2616_v63, %v632_v55 }
  0x5e   : > { %v2823_v45 = vmul.u32.u64.low %v2791_v54, %v562_v43  ;;  %v2824_v46 = vmul.u32.u64.high %v2791_v54, %v562_v43, %v2823_v45  ;;  %v2827_v47 = vmul.u32.u64.low %v2791_v54, %v558_v42  ;;  %v2828_v48 = vmul.u32.u64.high %v2791_v54, %v558_v42, %v2827_v47 }
  0x5f   : > { %v637_v49 = vor.u32 %v636_v40, %v635_v23  ;;  %v640_v50 = vor.u32 %v639_v44, %v638_v36  ;;  %v642_v53 = vshrl.u32 %v2617_v1, %v633_v16  ;;  %v644_v51 = vshll.u32 %v2617_v1, %v632_v55 }
  0x60   : > { %v645_v58 = vshrl.u32 %v2618_v3, %v633_v16  ;;  %v647_v60 = vshll.u32 %v2618_v3, %v632_v55  ;;  %v648_v62 = vshrl.u32 %v2619_v11, %v633_v16  ;;  %v570_v0 = vmul.u32 %v2791_v54, %v554_v41 }
  0x61   : > { %v643_v2 = vor.u32 %v642_v53, %v641_v52  ;;  %vm650_vm7 = vcmp.lt.s32.totalorder %v2802_v5, 1  ;;  %vm651_vm8 = vcmp.lt.s32.totalorder %v2802_v5, 2  ;;  %vm572_vm9 = vc.u32 %v2824_v46, %v2827_v47 }
  0x62   : > { %v573_v4 = vadd.s32 1, %v2828_v48  ;;  %v646_v6 = vor.u32 %v645_v58, %v644_v51  ;;  %vm652_vm10 = vcmp.lt.s32.totalorder %v2802_v5, 3  ;;  %v649_v7 = vor.u32 %v648_v62, %v647_v60 }
  0x63   : > { %vm653_vm11 = vcmp.lt.s32.totalorder %v2802_v5, 4  ;;  %v654_v55 = vsel %vm650_vm7, %v634_v39, %v637_v49  ;;  %v658_v8 = vsel %vm650_vm7, %v637_v49, %v640_v50  ;;  %v662_v12 = vsel %vm650_vm7, %v640_v50, %v643_v2  ;;  %v467_v39 = vld [vmem:[%s2751_s17] sm:$0xff] }
  0x64   : > { %v574_v54 = vsel %vm572_vm9, %v573_v4, %v2828_v48  ;;  %v655_v9 = vsel %vm653_vm11, %v643_v2, 2102212464  ;;  %v659_v10 = vsel %vm653_vm11, %v646_v6, 920167782  ;;  %v663_v17 = vsel %vm653_vm11, %v649_v7, 1326507024 }
  0x65   : > { %v575_v14 = vadd.s32 %v574_v54, %v570_v0  ;;  %v656_v15 = vsel %vm652_vm10, %v640_v50, %v655_v9  ;;  %v660_v16 = vsel %vm652_vm10, %v643_v2, %v659_v10  ;;  %v664_v24 = vsel %vm652_vm10, %v646_v6, %v663_v17 }
  0x66   : > { %v657_v19 = vsel %vm651_vm8, %v654_v55, %v656_v15  ;;  %v661_v23 = vsel %vm651_vm8, %v658_v8, %v660_v16  ;;  %v733_v25 = vsel %vm732_vm6, %v2795_v57, 0  ;;  %v665_v27 = vsel %vm651_vm8, %v662_v12, %v664_v24 }
  0x67   : > { %v576_v26 = vadd.s32 536870912, %v575_v14  ;;  %v2865_v28 = vmul.u32.u64.low %v2793_v56, %v661_v23  ;;  %v2866_v29 = vmul.u32.u64.high %v2793_v56, %v661_v23, %v2865_v28  ;;  %v500_v34 = vrot.slane %v2847_v13, %v2753_v20 }
  0x68   : > { %v2872_v36 = vmul.u32.u64.low %v2793_v56, %v665_v27  ;;  %v2873_v37 = vmul.u32.u64.high %v2793_v56, %v665_v27, %v2872_v36  ;;  %v721_v38 = vand.u32 2147483647, %v2780_v32  ;;  %v735_v40 = vand.u32 31, %v733_v25 }
  0x69   : > { %v2877_v57 = vshrl.u32 %v576_v26, 30  ;;  %v673_v5 = vmul.u32 %v2793_v56, %v657_v19  ;;  %v676_v42 = vadd.s32 1, %v2866_v29  ;;  %v2882_v44 = vmul.f32 %v500_v34, %v467_v39 }
  0x6a   : > { %v736_v43 = vsub.s32 32, %v735_v40  ;;  %vm675_vm12 = vc.u32 %v2873_v37, %v2865_v28  ;;  %v728_v45 = vand.u32 8388607, %v721_v38  ;;  %v734_v50 = vshrl.u32 %v733_v25, 5 }
  0x6b   : > { %v578_v41 = vshll.u32 %v2877_v57, 30  ;;  %v677_v49 = vsel %vm675_vm12, %v676_v42, %v2866_v29  ;;  %v738_v56 = vshll.u32 %v2614_v59, %v735_v40  ;;  %v741_v51 = vshll.u32 %v2615_v61, %v735_v40 }
  0x6c   : > { %v678_v52 = vadd.s32 %v677_v49, %v673_v5  ;;  %v739_v53 = vshrl.u32 %v2615_v61, %v736_v43  ;;  %v742_v58 = vshrl.u32 %v2616_v63, %v736_v43  ;;  %v744_v62 = vshll.u32 %v2616_v63, %v735_v40 }
  0x6d   : > { %v2888_v48 = vsub.s32 %v575_v14, %v578_v41  ;;  %v745_v0 = vshrl.u32 %v2617_v1, %v736_v43  ;;  %v747_v4 = vshll.u32 %v2617_v1, %v735_v40  ;;  %v1139_v6 = vand.u32 2139095040, %v2882_v44 }
  0x6e   : > { %v679_v2 = vadd.s32 536870912, %v678_v52  ;;  %v729_v55 = vor.u32 8388608, %v728_v45  ;;  %v740_v8 = vor.u32 %v739_v53, %v738_v56  ;;  %vm753_vm13 = vcmp.lt.s32.totalorder %v734_v50, 1 }
  0x6f   : > { %v581_v60 = vsub.s32 0, %v2888_v48  ;;  %v743_v9 = vor.u32 %v742_v58, %v741_v51  ;;  %v748_v10 = vshrl.u32 %v2618_v3, %v736_v43  ;;  %v750_v12 = vshll.u32 %v2618_v3, %v735_v40 }
  0x70   : > { %v2901_v54 = vshrl.u32 %v679_v2, 30  ;;  %v746_v15 = vor.u32 %v745_v0, %v744_v62  ;;  %v751_v16 = vshrl.u32 %v2619_v11, %v736_v43  ;;  %vm756_vm14 = vcmp.lt.s32.totalorder %v734_v50, 4 }
  0x71   : > { %v2340_v7 = vmin.u32 %v581_v60, %v2888_v48  ;;  %v749_v19 = vor.u32 %v748_v10, %v747_v4  ;;  %vm755_vm15 = vcmp.lt.s32.totalorder %v734_v50, 3  ;;  %v1140_v23 = vshrl.u32 %v1139_v6, 23 }
  0x72   : > { %v681_v17 = vshll.u32 %v2901_v54, 30  ;;  %v571_v24 = vadd.s32 %v2827_v47, %v2824_v46  ;;  %v737_v26 = vshrl.u32 %v2614_v59, %v736_v43  ;;  %v752_v27 = vor.u32 %v751_v16, %v750_v12 }
  0x73   : > { %v583_v14 = vclz %v2340_v7  ;;  %vm754_vm0 = vcmp.lt.s32.totalorder %v734_v50, 2  ;;  %v761_v34 = vsel %vm753_vm13, %v740_v8, %v743_v9  ;;  %v762_v36 = vsel %vm756_vm14, %v749_v19, 920167782 }
  0x74   : > { %v2910_v29 = vsub.s32 %v678_v52, %v681_v17  ;;  %v758_v39 = vsel %vm756_vm14, %v746_v15, 2102212464  ;;  %v763_v40 = vsel %vm755_vm15, %v746_v15, %v762_v36  ;;  %v766_v5 = vsel %vm756_vm14, %v752_v27, 1326507024 }
  0x75   : > { %v2341_v25 = vadd.s32 4294967294, %v583_v14  ;;  %v765_v47 = vsel %vm753_vm13, %v743_v9, %v746_v15  ;;  %v769_v42 = vshll.u32 %v729_v55, 8  ;;  %v757_v49 = vsel %vm753_vm13, %v737_v26, %v740_v8 }
  0x76   : > { %v684_v46 = vsub.s32 0, %v2910_v29  ;;  %v767_v56 = vsel %vm755_vm15, %v749_v19, %v766_v5  ;;  %v759_v51 = vsel %vm755_vm15, %v743_v9, %v758_v39  ;;  %v764_v58 = vsel %vm754_vm0, %v761_v34, %v763_v40 }
  0x77   : > { %vm2342_vm1 = vcmp.lt.s32.totalorder %v2341_v25, 0  ;;  %v768_v0 = vsel %vm754_vm0, %v765_v47, %v767_v56  ;;  %v2363_v2 = vadd.s32 4294967169, %v1140_v23  ;;  %v760_v8 = vsel %vm754_vm0, %v757_v49, %v759_v51 }
  0x78   : > { %v586_v41 = vsel %vm2342_vm1, 0, %v2341_v25  ;;  %v2344_v53 = vmin.u32 %v684_v46, %v2910_v29  ;;  %v2926_v6 = vmul.u32.u64.low %v769_v42, %v768_v0  ;;  %v2927_v7 = vmul.u32.u64.high %v769_v42, %v768_v0, %v2926_v6 }
  0x79   : > { %v587_v43 = vsub.s32 32, %v586_v41  ;;  %v591_v45 = vsub.s32 4294967266, %v586_v41  ;;  %v588_v52 = vshll.u32 %v2888_v48, %v586_v41  ;;  %v1146_v15 = vadd.s32 1, %v2363_v2 }
  0x7a   : > { %v686_v4 = vclz %v2344_v53  ;;  %v2930_v10 = vmul.u32.u64.low %v769_v42, %v764_v58  ;;  %v2931_v48 = vmul.u32.u64.high %v769_v42, %v764_v58, %v2930_v10  ;;  %v776_v16 = vmul.u32 %v769_v42, %v760_v8 }
  0x7b   : > { %v589_v60 = vshrl.u32 %v571_v24, %v587_v43  ;;  %v592_v62 = vadd.s32 127, %v591_v45  ;;  %vm1147_vm4 = vcmp.gt.s32.totalorder %v1146_v15, 0  ;;  %v674_v39 = vadd.s32 %v2865_v28, %v2873_v37  ;;  %v468_v43 = vld [vmem:[%s2751_s17 + $0x8] sm:$0xff] }
  0x7c   : > { %v2345_v9 = vadd.s32 4294967294, %v686_v4  ;;  %vm778_vm3 = vc.u32 %v2927_v7, %v2930_v10  ;;  %v779_v19 = vadd.s32 1, %v2931_v48  ;;  %v1148_v27 = vsel %vm1147_vm4, %v1146_v15, 0 }
  0x7d   : > { %v593_v55 = vshll.u32 %v592_v62, 23  ;;  %v590_v12 = vor.u32 %v589_v60, %v588_v52  ;;  %v1150_v46 = vand.u32 31, %v1148_v27  ;;  %v504_v47 = vrot.slane %v2847_v13, %v2755_v21 }
  0x7e   : > { %vm2346_vm2 = vcmp.lt.s32.totalorder %v2345_v9, 0  ;;  %v780_v25 = vsel %vm778_vm3, %v779_v19, %v2931_v48  ;;  %v1136_v42 = vand.u32 2147483647, %v2882_v44  ;;  %vm517_vm5 = vcmp.lt.s32.totalorder %v2776_v30, 0 }
  0x7f   : > { %v594_v14 = vor.u32 4788187, %v593_v55  ;;  %v689_v17 = vsel %vm2346_vm2, 0, %v2345_v9  ;;  %v597_v23 = vcvt.s32.f32 %v590_v12  ;;  %v781_v26 = vadd.s32 %v780_v25, %v776_v16 }
  0x80   : > { %v694_v24 = vsub.s32 4294967266, %v689_v17  ;;  %v690_v40 = vsub.s32 32, %v689_v17  ;;  %v691_v49 = vshll.u32 %v2910_v29, %v689_v17  ;;  %v1151_v37 = vsub.s32 32, %v1150_v46 }
  0x81   : > { %v595_v50 = vand.u32 2147483647, %v594_v14  ;;  %v782_v34 = vadd.s32 536870912, %v781_v26  ;;  %v601_v53 = vsub.s32 4, %v2877_v57  ;;  %v508_v51 = vrot.slane %v2847_v13, %v2757_v22 }
  0x82   : > { %v695_v5 = vadd.s32 127, %v694_v24  ;;  %v692_v56 = vshrl.u32 %v674_v39, %v690_v40  ;;  %v2952_v58 = vmul.f32 %v504_v47, %v468_v43  ;;  %vm2956_vm6 = vcmp.le.f32.partialorder %v515_v33, 0.7853982 }
  0x83   : > { %v598_v36 = vmul.f32 %v597_v23, %v595_v50  ;;  %v2940_v41 = vshrl.u32 %v782_v34, 30  ;;  %v1143_v29 = vand.u32 8388607, %v1136_v42  ;;  %v1153_v4 = vshll.u32 %v2614_v59, %v1150_v46 }
  0x84   : > { %v696_v52 = vshll.u32 %v695_v5, 23  ;;  %v693_v0 = vor.u32 %v692_v56, %v691_v49  ;;  %v1154_v55 = vshrl.u32 %v2615_v61, %v1151_v37  ;;  %v1156_v8 = vshll.u32 %v2615_v61, %v1150_v46 }
  0x85   : > { %v599_v45 = vxor.u32 2147483648, %v598_v36  ;;  %v784_v28 = vshll.u32 %v2940_v41, 30  ;;  %v1157_v33 = vshrl.u32 %v2616_v63, %v1151_v37  ;;  %v602_v48 = vsel %vm517_vm5, %v601_v53, %v2877_v57 }
  0x86   : > { %v697_v2 = vor.u32 4788187, %v696_v52  ;;  %vm620_vm7 = vcmp.lt.s32.totalorder %v2778_v31, 0  ;;  %v1149_v12 = vshrl.u32 %v1148_v27, 5  ;;  %v1162_v9 = vshll.u32 %v2617_v1, %v1150_v46 }
  0x87   : > { %v600_v62 = vsel %vm517_vm5, %v599_v45, %v598_v36  ;;  %v2965_v6 = vsub.s32 %v781_v26, %v784_v28  ;;  %v1163_v14 = vshrl.u32 %v2618_v3, %v1151_v37  ;;  %v1144_v16 = vor.u32 8388608, %v1143_v29 }
  0x88   : > { %v603_v15 = vsel %vm2956_vm6, %v2776_v30, %v600_v62  ;;  %v1159_v17 = vshll.u32 %v2616_v63, %v1150_v46  ;;  %v1160_v19 = vshrl.u32 %v2617_v1, %v1151_v37  ;;  %v698_v23 = vand.u32 2147483647, %v697_v2 }
  0x89   : > { %v700_v50 = vcvt.s32.f32 %v693_v0  ;;  %v1165_v57 = vshll.u32 %v2618_v3, %v1150_v46  ;;  %v1166_v24 = vshrl.u32 %v2619_v11, %v1151_v37  ;;  %v604_v25 = vsel %vm2956_vm6, 0, %v602_v48  ;;  %v469_v48 = vld [vmem:[%s2751_s17 + $0x10] sm:$0xff] }
  0x8a   : > { %v787_v26 = vsub.s32 0, %v2965_v6  ;;  %v1155_v27 = vor.u32 %v1154_v55, %v1153_v4  ;;  %v1158_v34 = vor.u32 %v1157_v33, %v1156_v8  ;;  %2526 = vcosq.f32 %v603_v15 }
  0x8b   : > { %v704_v36 = vsub.s32 4, %v2901_v54  ;;  %v1164_v39 = vor.u32 %v1163_v14, %v1162_v9  ;;  %vm1168_vm8 = vcmp.lt.s32.totalorder %v1149_v12, 1  ;;  %2528 = vsinq.f32 %v603_v15 }
  0x8c   : > { %v1152_v40 = vshrl.u32 %v2614_v59, %v1151_v37  ;;  %v1161_v5 = vor.u32 %v1160_v19, %v1159_v17  ;;  %vm1171_vm9 = vcmp.lt.s32.totalorder %v1149_v12, 4  ;;  %v701_v46 = vmul.f32 %v700_v50, %v698_v23 }
  0x8d   : > { %v807_v47 = vsub.s32 4, %v2940_v41  ;;  %v1167_v43 = vor.u32 %v1166_v24, %v1165_v57  ;;  %vm1170_vm10 = vcmp.lt.s32.totalorder %v1149_v12, 3  ;;  %v2348_v45 = vmin.u32 %v787_v26, %v2965_v6 }
  0x8e   : > { %vm1169_vm11 = vcmp.lt.s32.totalorder %v1149_v12, 2  ;;  %v1173_v49 = vsel %vm1171_vm9, %v1161_v5, 2102212464  ;;  %v1176_v56 = vsel %vm1168_vm8, %v1155_v27, %v1158_v34  ;;  %vm2994_vm12 = vcmp.le.f32.partialorder %v618_v35, 0.7853982 }
  0x8f   : > { %vm723_vm13 = vcmp.lt.s32.totalorder %v2780_v32, 0  ;;  %v1177_v28 = vsel %vm1171_vm9, %v1164_v39, 920167782  ;;  %v1184_v37 = vshll.u32 %v1144_v16, 8  ;;  %v705_v53 = vsel %vm620_vm7, %v704_v36, %v2901_v54 }
  0x90   : > { %v917_v60 = vadd.s32 3, %v604_v25  ;;  %v1172_v29 = vsel %vm1168_vm8, %v1152_v40, %v1155_v27  ;;  %v1178_v62 = vsel %vm1170_vm10, %v1161_v5, %v1177_v28  ;;  %v1174_v35 = vsel %vm1170_vm10, %v1158_v34, %v1173_v49 }
  0x91   : > { %v1179_v0 = vsel %vm1169_vm11, %v1176_v56, %v1178_v62  ;;  %v1180_v2 = vsel %vm1168_vm8, %v1158_v34, %v1161_v5  ;;  %v1181_v4 = vsel %vm1171_vm9, %v1167_v43, 1326507024  ;;  %v702_v55 = vxor.u32 2147483648, %v701_v46 }
  0x92   : > { %v789_v8 = vclz %v2348_v45  ;;  %v808_v33 = vsel %vm723_vm13, %v807_v47, %v2940_v41  ;;  %v1182_v54 = vsel %vm1170_vm10, %v1164_v39, %v1181_v4  ;;  %v3014_v9 = vand.u32 3, %v604_v25 }
  0x93   : > { %v1183_v14 = vsel %vm1169_vm11, %v1180_v2, %v1182_v54  ;;  %v3017_v15 = vmul.u32.u64.low %v1184_v37, %v1179_v0  ;;  %v3018_v16 = vmul.u32.u64.high %v1184_v37, %v1179_v0, %v3017_v15  ;;  %v707_v17 = vsel %vm2994_vm12, 0, %v705_v53 }
  0x94   : > { %vm3025_vm14 = vcmp.le.f32.partialorder %v721_v38, 0.7853982  ;;  %v1175_v41 = vsel %vm1169_vm11, %v1172_v29, %v1174_v35  ;;  %v1242_v23 = vand.u32 2139095040, %v2952_v58  ;;  %v2527_v50 = vpop.eup %2526  ;;  %v3033_v24 = vand.u32 3, %v917_v60 }
  0x95   : > { %v810_v57 = vsel %vm3025_vm14, 0, %v808_v33  ;;  %v3035_v25 = vmul.u32.u64.low %v1184_v37, %v1183_v14  ;;  %v3036_v26 = vmul.u32.u64.high %v1184_v37, %v1183_v14, %v3035_v25  ;;  %v2529_v27 = vpop.eup %2528  ;;  %v3041_v38 = vmul.f32 %v508_v51, %v469_v48 }
  0x96   : > { %v703_v12 = vsel %vm620_vm7, %v702_v55, %v701_v46  ;;  %v2349_v34 = vadd.s32 4294967294, %v789_v8  ;;  %v1243_v36 = vshrl.u32 %v1242_v23, 23  ;;  %vm610_vm15 = vcmp.eq.s32.totalorder %v3014_v9, 0 }
  0x97   : > { %v1021_v39 = vadd.s32 3, %v707_v17  ;;  %v1191_v40 = vmul.u32 %v1184_v37, %v1175_v41  ;;  %v1194_v5 = vadd.s32 1, %v3018_v16  ;;  %vm613_vm0 = vcmp.eq.s32.totalorder %v3014_v9, 2 }
  0x98   : > { %v3048_v47 = vand.u32 3, %v707_v17  ;;  %v1125_v43 = vadd.s32 3, %v810_v57  ;;  %v2367_v45 = vadd.s32 4294967169, %v1243_v36  ;;  %vm609_vm1 = vcmp.lt.s32.totalorder %v3014_v9, 2 }
  0x99   : > { %v706_v13 = vsel %vm2994_vm12, %v2778_v31, %v703_v12  ;;  %v777_v51 = vadd.s32 %v2930_v10, %v2927_v7  ;;  %vm920_vm2 = vcmp.eq.s32.totalorder %v3033_v24, 0  ;;  %vm1193_vm3 = vc.u32 %v3036_v26, %v3017_v15 }
  0x9a   : > { %v614_v46 = vxor.u32 2147483648, %v2527_v50  ;;  %vm2350_vm4 = vcmp.lt.s32.totalorder %v2349_v34, 0  ;;  %v1195_v49 = vsel %vm1193_vm3, %v1194_v5, %v3018_v16  ;;  %v1249_v56 = vadd.s32 1, %v2367_v45 }
  0x9b   : > { %v611_v28 = vxor.u32 2147483648, %v2529_v27  ;;  %vm923_vm5 = vcmp.eq.s32.totalorder %v3033_v24, 2  ;;  %v3061_v37 = vand.u32 3, %v1021_v39  ;;  %v1196_v52 = vadd.s32 %v1195_v49, %v1191_v40 }
  0x9c   : > { %v3063_v53 = vand.u32 3, %v810_v57  ;;  %v3065_v60 = vand.u32 3, %v1125_v43  ;;  %v1239_v7 = vand.u32 2147483647, %v2952_v58  ;;  %vm1250_vm6 = vcmp.gt.s32.totalorder %v1249_v56, 0 }
  0x9d   : > { %vm607_vm7 = vweird.f32 %v2776_v30  ;;  %2530 = vcosq.f32 %v706_v13  ;;  %v792_v10 = vsel %vm2350_vm4, 0, %v2349_v34  ;;  %v1197_v29 = vadd.s32 536870912, %v1196_v52 }
  0x9e   : > { %v1251_v62 = vsel %vm1250_vm6, %v1249_v56, 0  ;;  %v615_v35 = vsel %vm613_vm0, %v614_v46, %v2529_v27  ;;  %2532 = vsinq.f32 %v706_v13  ;;  %v925_v0 = vsel %vm923_vm5, %v614_v46, %v2529_v27 }
  0x9f   : > { %v1253_v2 = vand.u32 31, %v1251_v62  ;;  %v612_v4 = vsel %vm610_vm15, %v2527_v50, %v611_v28  ;;  %v793_v55 = vsub.s32 32, %v792_v10  ;;  %v922_v8 = vsel %vm920_vm2, %v2527_v50, %v611_v28 }
  0xa0   : > { %v3075_v33 = vshrl.u32 %v1197_v29, 30  ;;  %v797_v54 = vsub.s32 4294967266, %v792_v10  ;;  %vm919_vm8 = vcmp.lt.s32.totalorder %v3033_v24, 2  ;;  %v3078_v48 = vshrl.u32 %v1251_v62, 5 }
  0xa1   : > { %v1254_v14 = vsub.s32 32, %v1253_v2  ;;  %v1345_v16 = vand.u32 2139095040, %v3041_v38  ;;  %v1256_v41 = vshll.u32 %v2614_v59, %v1253_v2  ;;  %v1259_v23 = vshll.u32 %v2615_v61, %v1253_v2 }
  0xa2   : > { %v1199_v17 = vshll.u32 %v3075_v33, 30  ;;  %v1265_v57 = vshll.u32 %v2617_v1, %v1253_v2  ;;  %v1262_v27 = vshll.u32 %v2616_v63, %v1253_v2  ;;  %v1268_v39 = vshll.u32 %v2618_v3, %v1253_v2 }
  0xa3   : > { %v1257_v50 = vshrl.u32 %v2615_v61, %v1254_v14  ;;  %v1260_v25 = vshrl.u32 %v2616_v63, %v1254_v14  ;;  %v1263_v12 = vshrl.u32 %v2617_v1, %v1254_v14  ;;  %v1266_v36 = vshrl.u32 %v2618_v3, %v1254_v14 }
  0xa4   : > { %v3089_v34 = vsub.s32 %v1196_v52, %v1199_v17  ;;  %v1269_v40 = vshrl.u32 %v2619_v11, %v1254_v14  ;;  %v616_v5 = vsel %vm609_vm1, %v612_v4, %v615_v35  ;;  %v794_v43 = vshll.u32 %v2965_v6, %v792_v10 }
  0xa5   : > { %v795_v45 = vshrl.u32 %v777_v51, %v793_v55  ;;  %v1246_v13 = vand.u32 8388607, %v1239_v7  ;;  %v798_v46 = vadd.s32 127, %v797_v54  ;;  %v1267_v56 = vor.u32 %v1266_v36, %v1265_v57 }
  0xa6   : > { %v1202_v49 = vsub.s32 0, %v3089_v34  ;;  %v1346_v28 = vshrl.u32 %v1345_v16, 23  ;;  %v1258_v52 = vor.u32 %v1257_v50, %v1256_v41  ;;  %v1261_v29 = vor.u32 %v1260_v25, %v1259_v23 }
  0xa7   : > { %v1264_v62 = vor.u32 %v1263_v12, %v1262_v27  ;;  %vm1274_vm9 = vcmp.lt.s32.totalorder %v3078_v48, 4  ;;  %v3101_v2 = vpop.eup %2530  ;;  %v1270_v35 = vor.u32 %v1269_v40, %v1268_v39  ;;  %vm1271_vm10 = vcmp.lt.s32.totalorder %v3078_v48, 1 }
  0xa8   : > { %v2364_v9 = vmin.u32 %v1202_v49, %v3089_v34  ;;  %vm1273_vm11 = vcmp.lt.s32.totalorder %v3078_v48, 3  ;;  %v3106_v6 = vpop.eup %2532  ;;  %v3110_v51 = vsel %vm607_vm7, nan, %v616_v5  ;;  %v1247_v10 = vor.u32 8388608, %v1246_v13 }
  0xa9   : > { %v1255_v4 = vshrl.u32 %v2614_v59, %v1254_v14  ;;  %v1280_v55 = vsel %vm1274_vm9, %v1267_v56, 920167782  ;;  %v799_v54 = vshll.u32 %v798_v46, 23  ;;  %v1276_v17 = vsel %vm1274_vm9, %v1264_v62, 2102212464 }
  0xaa   : > { %v1204_v16 = vclz %v2364_v9  ;;  %v2371_v41 = vadd.s32 4294967169, %v1346_v28  ;;  %vm1272_vm12 = vcmp.lt.s32.totalorder %v3078_v48, 2  ;;  %v1279_v23 = vsel %vm1271_vm10, %v1258_v52, %v1261_v29 }
  0xab   : > { %v1281_v57 = vsel %vm1273_vm11, %v1264_v62, %v1280_v55  ;;  %v1283_v14 = vsel %vm1271_vm10, %v1261_v29, %v1264_v62  ;;  %v3124_v50 = vor.u32 %v795_v45, %v794_v43  ;;  %v926_v25 = vsel %vm919_vm8, %v922_v8, %v925_v0 }
  0xac   : > { %v2365_v27 = vadd.s32 4294967294, %v1204_v16  ;;  %v1284_v12 = vsel %vm1274_vm9, %v1270_v35, 1326507024  ;;  %v1275_v36 = vsel %vm1271_vm10, %v1255_v4, %v1258_v52  ;;  %v1277_v39 = vsel %vm1273_vm11, %v1261_v29, %v1276_v17 }
  0xad   : > { %v1285_v40 = vsel %vm1273_vm11, %v1267_v56, %v1284_v12  ;;  %v1287_v5 = vshll.u32 %v1247_v10, 8  ;;  %v1192_v43 = vadd.s32 %v3017_v15, %v3036_v26  ;;  %v1282_v24 = vsel %vm1272_vm12, %v1279_v23, %v1281_v57 }
  0xae   : > { %vm2366_vm15 = vcmp.lt.s32.totalorder %v2365_v27, 0  ;;  %v1286_v0 = vsel %vm1272_vm12, %v1283_v14, %v1285_v40  ;;  %v3142_v8 = vor.u32 4788187, %v799_v54  ;;  %v1342_v13 = vand.u32 2147483647, %v3041_v38 }
  0xaf   : > { %v1207_v45 = vsel %vm2366_vm15, 0, %v2365_v27  ;;  %v1352_v46 = vadd.s32 1, %v2371_v41  ;;  %vm716_vm0 = vcmp.eq.s32.totalorder %v3048_v47, 2  ;;  %v1278_v15 = vsel %vm1272_vm12, %v1275_v36, %v1277_v39 }
  0xb0   : > { %v1208_v49 = vsub.s32 32, %v1207_v45  ;;  %v1209_v56 = vshll.u32 %v3089_v34, %v1207_v45  ;;  %v1212_v28 = vsub.s32 4294967266, %v1207_v45  ;;  %v3158_v9 = vsel %vm607_vm7, nan, %v926_v25 }
  0xb1   : > { %v3149_v26 = vmul.u32.u64.low %v1287_v5, %v1286_v0  ;;  %v3150_v52 = vmul.u32.u64.high %v1287_v5, %v1286_v0, %v3149_v26  ;;  %v3152_v29 = vmul.u32.u64.low %v1287_v5, %v1282_v24  ;;  %v3153_v62 = vmul.u32.u64.high %v1287_v5, %v1282_v24, %v3152_v29 }
  0xb2   : > { %v1210_v35 = vshrl.u32 %v1192_v43, %v1208_v49  ;;  %v1213_v10 = vadd.s32 127, %v1212_v28  ;;  %vm1353_vm1 = vcmp.gt.s32.totalorder %v1352_v46, 0  ;;  %v714_v34 = vxor.u32 2147483648, %v3106_v6 }
  0xb3   : > { %v717_v4 = vxor.u32 2147483648, %v3101_v2  ;;  %v803_v48 = vcvt.s32.f32 %v3124_v50  ;;  %v1354_v55 = vsel %vm1353_vm1, %v1352_v46, 0  ;;  %vm1138_vm2 = vcmp.lt.s32.totalorder %v2882_v44, 0 }
  0xb4   : > { %v1211_v54 = vor.u32 %v1210_v35, %v1209_v56  ;;  %v1214_v16 = vshll.u32 %v1213_v10, 23  ;;  %v1294_v17 = vmul.u32 %v1287_v5, %v1278_v15  ;;  %v1356_v41 = vand.u32 31, %v1354_v55 }
  0xb5   : > { %v801_v30 = vand.u32 2147483647, %v3142_v8  ;;  %vm1296_vm3 = vc.u32 %v3150_v52, %v3152_v29  ;;  %v1297_v23 = vadd.s32 1, %v3153_v62  ;;  %v1349_v57 = vand.u32 8388607, %v1342_v13 }
  0xb6   : > { %v1215_v14 = vor.u32 4788187, %v1214_v16  ;;  %v1218_v25 = vcvt.s32.f32 %v1211_v54  ;;  %v3170_v50 = vshrl.u32 %v1354_v55, 5  ;;  %v1357_v27 = vsub.s32 32, %v1356_v41 }
  0xb7   : > { %vm3174_vm4 = vcmp.le.f32.partialorder %v1136_v42, 0.7853982  ;;  %v1298_v36 = vsel %vm1296_vm3, %v1297_v23, %v3153_v62  ;;  %v1359_v39 = vshll.u32 %v2614_v59, %v1356_v41  ;;  %v1362_v40 = vshll.u32 %v2615_v61, %v1356_v41 }
  0xb8   : > { %v1368_v5 = vshll.u32 %v2617_v1, %v1356_v41  ;;  %vm1027_vm5 = vcmp.eq.s32.totalorder %v3061_v37, 2  ;;  %v1216_v43 = vand.u32 2147483647, %v1215_v14  ;;  %v1299_v24 = vadd.s32 %v1298_v36, %v1294_v17 }
  0xb9   : > { %v1360_v0 = vshrl.u32 %v2615_v61, %v1357_v27  ;;  %v1365_v8 = vshll.u32 %v2616_v63, %v1356_v41  ;;  %vm713_vm6 = vcmp.eq.s32.totalorder %v3048_v47, 0  ;;  %v1363_v42 = vshrl.u32 %v2616_v63, %v1357_v27 }
  0xba   : > { %v1366_v45 = vshrl.u32 %v2617_v1, %v1357_v27  ;;  %v1369_v46 = vshrl.u32 %v2618_v3, %v1357_v27  ;;  %v1371_v49 = vshll.u32 %v2618_v3, %v1356_v41  ;;  %vm1024_vm7 = vcmp.eq.s32.totalorder %v3061_v37, 0 }
  0xbb   : > { %v1219_v56 = vmul.f32 %v1218_v25, %v1216_v43  ;;  %v1300_v28 = vadd.s32 536870912, %v1299_v24  ;;  %v1350_v15 = vor.u32 8388608, %v1349_v57  ;;  %v1372_v26 = vshrl.u32 %v2619_v11, %v1357_v27 }
  0xbc   : > { %v718_v61 = vsel %vm716_vm0, %v717_v4, %v3106_v6  ;;  %v1361_v63 = vor.u32 %v1360_v0, %v1359_v39  ;;  %v1364_v62 = vor.u32 %v1363_v42, %v1362_v40  ;;  %v1370_v1 = vor.u32 %v1369_v46, %v1368_v5 }
  0xbd   : > { %v1220_v35 = vxor.u32 2147483648, %v1219_v56  ;;  %v3197_v10 = vshrl.u32 %v1300_v28, 30  ;;  %v1367_v3 = vor.u32 %v1366_v45, %v1365_v8  ;;  %vm1374_vm8 = vcmp.lt.s32.totalorder %v3170_v50, 1 }
  0xbe   : > { %vm712_vm9 = vcmp.lt.s32.totalorder %v3048_v47, 2  ;;  %v804_v55 = vmul.f32 %v803_v48, %v801_v30  ;;  %vm1023_vm10 = vcmp.lt.s32.totalorder %v3061_v37, 2  ;;  %v1358_v11 = vshrl.u32 %v2614_v59, %v1357_v27 }
  0xbf   : > { %v1373_v54 = vor.u32 %v1372_v26, %v1371_v49  ;;  %vm1377_vm11 = vcmp.lt.s32.totalorder %v3170_v50, 4  ;;  %v1302_v16 = vshll.u32 %v3197_v10, 30  ;;  %vm1376_vm12 = vcmp.lt.s32.totalorder %v3170_v50, 3 }
  0xc0   : > { %v1379_v17 = vsel %vm1377_vm11, %v1367_v3, 2102212464  ;;  %v1390_v41 = vshll.u32 %v1350_v15, 8  ;;  %v1221_v23 = vsel %vm1138_vm2, %v1220_v35, %v1219_v56  ;;  %vm1375_vm15 = vcmp.lt.s32.totalorder %v3170_v50, 2 }
  0xc1   : > { %v1382_v48 = vsel %vm1374_vm8, %v1361_v63, %v1364_v62  ;;  %v1383_v59 = vsel %vm1377_vm11, %v1370_v1, 920167782  ;;  %v1222_v30 = vsub.s32 4, %v3075_v33  ;;  %v3216_v57 = vsub.s32 %v1299_v24, %v1302_v16 }
  0xc2   : > { %v1386_v14 = vsel %vm1374_vm8, %v1364_v62, %v1367_v3  ;;  %v3221_v25 = vand.u32 127, %v478_v18  ;;  %v1378_v27 = vsel %vm1374_vm8, %v1358_v11, %v1361_v63  ;;  %v1380_v36 = vsel %vm1376_vm12, %v1364_v62, %v1379_v17 }
  0xc3   : > { %v1384_v39 = vsel %vm1376_vm12, %v1367_v3, %v1383_v59  ;;  %v1387_v40 = vsel %vm1377_vm11, %v1373_v54, 1326507024  ;;  %vm710_vm0 = vweird.f32 %v2778_v31  ;;  %v1224_v5 = vsel %vm3174_vm4, %v2882_v44, %v1221_v23 }
  0xc4   : > { %v1305_v18 = vsub.s32 0, %v3216_v57  ;;  %v1385_v43 = vsel %vm1375_vm15, %v1382_v48, %v1384_v39  ;;  %v1388_v24 = vsel %vm1376_vm12, %v1370_v1, %v1387_v40  ;;  %v1029_v0 = vsel %vm1027_vm5, %v717_v4, %v3106_v6 }
  0xc5   : > { %v1389_v8 = vsel %vm1375_vm15, %v1386_v14, %v1388_v24  ;;  %v3247_v42 = vmul.u32.u64.low %v1390_v41, %v1385_v43  ;;  %v3248_v45 = vmul.u32.u64.high %v1390_v41, %v1385_v43, %v3247_v42  ;;  %v715_v46 = vsel %vm713_vm6, %v3101_v2, %v714_v34 }
  0xc6   : > { %v805_v49 = vxor.u32 2147483648, %v804_v55  ;;  %v2368_v56 = vmin.u32 %v1305_v18, %v3216_v57  ;;  %v1381_v28 = vsel %vm1375_vm15, %v1378_v27, %v1380_v36  ;;  %v1026_v4 = vsel %vm1024_vm7, %v3101_v2, %v714_v34 }
  0xc7   : > { %2534 = vcosq.f32 %v1224_v5  ;;  %vm1241_vm1 = vcmp.lt.s32.totalorder %v2952_v58, 0  ;;  %v3265_v15 = vmul.u32.u64.low %v1390_v41, %v1389_v8  ;;  %v3266_v26 = vmul.u32.u64.high %v1390_v41, %v1389_v8, %v3265_v15 }
  0xc8   : > { %v1223_v63 = vsel %vm1138_vm2, %v1222_v30, %v3075_v33  ;;  %2536 = vsinq.f32 %v1224_v5  ;;  %v1307_v62 = vclz %v2368_v56  ;;  %v1759_v50 = vadd.s32 128, %v3221_v25 }
  0xc9   : > { %v1397_v1 = vmul.u32 %v1390_v41, %v1381_v28  ;;  %v1400_v6 = vadd.s32 1, %v3248_v45  ;;  %v3274_v35 = vmul.u32.u64.low 2863311531, %v3221_v25  ;;  %v3275_v2 = vmul.u32.u64.high 2863311531, %v3221_v25, %v3274_v35 }
  0xca   : > { %v719_v34 = vsel %vm712_vm9, %v715_v46, %v718_v61  ;;  %v806_v3 = vsel %vm723_vm13, %v805_v49, %v804_v55  ;;  %v1030_v33 = vsel %vm1023_vm10, %v1026_v4, %v1029_v0  ;;  %v2369_v11 = vadd.s32 4294967294, %v1307_v62 }
  0xcb   : > { %v1225_v54 = vsel %vm3174_vm4, 0, %v1223_v63  ;;  %vm1399_vm2 = vc.u32 %v3266_v26, %v3247_v42  ;;  %v3287_v16 = vmul.u32.u64.low 2863311531, %v1759_v50  ;;  %v3288_v17 = vmul.u32.u64.high 2863311531, %v1759_v50, %v3287_v16 }
  0xcc   : > { %v1295_v47 = vadd.s32 %v3152_v29, %v3150_v52  ;;  %vm2370_vm3 = vcmp.lt.s32.totalorder %v2369_v11, 0  ;;  %v1325_v61 = vsub.s32 4, %v3197_v10  ;;  %v1401_v55 = vsel %vm1399_vm2, %v1400_v6, %v3248_v45 }
  0xcd   : > { %v3297_v37 = vsel %vm3025_vm14, %v2780_v32, %v806_v3  ;;  %v3299_v12 = vand.u32 3, %v1225_v54  ;;  %v1310_v41 = vsel %vm2370_vm3, 0, %v2369_v11  ;;  %v1402_v23 = vadd.s32 %v1401_v55, %v1397_v1 }
  0xce   : > { %v1311_v48 = vsub.s32 32, %v1310_v41  ;;  %v1312_v59 = vshll.u32 %v3216_v57, %v1310_v41  ;;  %v1315_v30 = vsub.s32 4294967266, %v1310_v41  ;;  %v1538_v14 = vadd.s32 3, %v1225_v54 }
  0xcf   : > { %v3304_v52 = vsel %vm710_vm0, nan, %v719_v34  ;;  %vm3308_vm13 = vcmp.le.f32.partialorder %v1239_v7, 0.7853982  ;;  %v1403_v19 = vadd.s32 536870912, %v1402_v23  ;;  %v1767_v27 = vshrl.u32 %v3275_v2, 1 }
  0xd0   : > { %v1313_v36 = vshrl.u32 %v1295_v47, %v1311_v48  ;;  %v1316_v39 = vadd.s32 127, %v1315_v30  ;;  %v1326_v57 = vsel %vm1241_vm1, %v1325_v61, %v3197_v10  ;;  %v3317_v40 = vadd.s32 256, %v3221_v25 }
  0xd1   : > { %v2535_v5 = vpop.eup %2534  ;;  %2538 = vcosq.f32 %v3297_v37  ;;  %v3322_v7 = vsel %vm710_vm0, nan, %v1030_v33  ;;  %v3324_v18 = vshrl.u32 %v1403_v19, 30  ;;  %v1768_v43 = vmul.u32 3, %v1767_v27 }
  0xd2   : > { %v2537_v24 = vpop.eup %2536  ;;  %vm1230_vm14 = vcmp.lt.s32.totalorder %v3299_v12, 2  ;;  %v1314_v0 = vor.u32 %v1313_v36, %v1312_v59  ;;  %v1317_v8 = vshll.u32 %v1316_v39, 23  ;;  %v1539_v45 = vand.u32 3, %v1538_v14 }
  0xd3   : > { %v1328_v10 = vsel %vm3308_vm13, 0, %v1326_v57  ;;  %v1405_v46 = vshll.u32 %v3324_v18, 30  ;;  %v1769_v49 = vsub.s32 %v3221_v25, %v1768_v43  ;;  %v1778_v31 = vshrl.u32 %v3288_v17, 1 }
  0xd4   : > { %vm1228_vm4 = vweird.f32 %v2882_v44  ;;  %v1318_v56 = vor.u32 4788187, %v1317_v8  ;;  %v1321_v28 = vcvt.s32.f32 %v1314_v0  ;;  %v1232_v63 = vxor.u32 2147483648, %v2537_v24 }
  0xd5   : > { %v3334_v4 = vmul.u32.u64.low 2863311531, %v3317_v40  ;;  %v3335_v15 = vmul.u32.u64.high 2863311531, %v3317_v40, %v3334_v4  ;;  %v1235_v62 = vxor.u32 2147483648, %v2535_v5  ;;  %v3337_v1 = vsub.s32 %v1402_v23, %v1405_v46 }
  0xd6   : > { %v1779_v6 = vmul.u32 3, %v1778_v31  ;;  %vm1231_vm5 = vcmp.eq.s32.totalorder %v3299_v12, 0  ;;  %vm1234_vm6 = vcmp.eq.s32.totalorder %v3299_v12, 2  ;;  %v1319_v35 = vand.u32 2147483647, %v1318_v56 }
  0xd7   : > { %v1642_v2 = vadd.s32 3, %v1328_v10  ;;  %v1408_v34 = vsub.s32 0, %v3337_v1  ;;  %vm1794_vm7 = vcmp.ne.s32.totalorder %v1769_v49, 0  ;;  %vm1797_vm8 = vcmp.lt.s32.totalorder %v1769_v49, 0 }
  0xd8   : > { %v1780_v3 = vsub.s32 %v1759_v50, %v1779_v6  ;;  %v1322_v33 = vmul.f32 %v1321_v28, %v1319_v35  ;;  %v3342_v11 = vand.u32 3, %v1328_v10  ;;  %vm1541_vm9 = vcmp.eq.s32.totalorder %v1539_v45, 0  ;;  %vm3350_vm0 = vmand %vm1797_vm8, %vm1794_vm7 }
  0xd9   : > { %vm1544_vm10 = vcmp.eq.s32.totalorder %v1539_v45, 2  ;;  %v1233_v54 = vsel %vm1231_vm5, %v2535_v5, %v1232_v63  ;;  %v1236_v16 = vsel %vm1234_vm6, %v1235_v62, %v2537_v24  ;;  %vm1344_vm11 = vcmp.lt.s32.totalorder %v3041_v38, 0 }
  0xda   : > { %v2372_v17 = vmin.u32 %v1408_v34, %v3337_v1  ;;  %v1803_v47 = vadd.s32 3, %v1769_v49  ;;  %v1323_v61 = vxor.u32 2147483648, %v1322_v33  ;;  %vm1540_vm12 = vcmp.lt.s32.totalorder %v1539_v45, 2 }
  0xdb   : > { %v3346_v55 = vand.u32 3, %v1642_v2  ;;  %vm1795_vm15 = vcmp.ne.s32.totalorder %v1780_v3, 0  ;;  %v3354_v41 = vpop.eup %2538  ;;  %v1543_v48 = vsel %vm1541_vm9, %v2535_v5, %v1232_v63  ;;  %v1546_v59 = vsel %vm1544_vm10, %v1235_v62, %v2537_v24 }
  0xdc   : > { %v1410_v23 = vclz %v2372_v17  ;;  %vm1798_vm2 = vcmp.lt.s32.totalorder %v1780_v3, 0  ;;  %v1237_v30 = vsel %vm1230_vm14, %v1233_v54, %v1236_v16  ;;  %v1324_v14 = vsel %vm1241_vm1, %v1323_v61, %v1322_v33 }
  0xdd   : > { %vm3362_vm3 = vcmp.le.f32.partialorder %v1342_v13, 0.7853982  ;;  %v1789_v27 = vshrl.u32 %v3335_v15, 1  ;;  %v1804_v36 = vadd.s32 3, %v1780_v3  ;;  %2540 = vsinq.f32 %v3297_v37  ;;  %vm1801_vm14 = vmand %vm1798_vm2, %vm1795_vm15 }
  0xde   : > { %v1327_v39 = vsel %vm3308_vm13, %v2952_v58, %v1324_v14  ;;  %v2373_v12 = vadd.s32 4294967294, %v1410_v23  ;;  %v1806_v57 = vsel %vm3350_vm0, %v1803_v47, %v1769_v49  ;;  %v1398_v13 = vadd.s32 %v3247_v42, %v3266_v26 }
  0xdf   : > { %2542 = vcosq.f32 %v1327_v39  ;;  %v1428_v5 = vsub.s32 4, %v3324_v18  ;;  %v1238_v43 = vsel %vm1228_vm4, nan, %v1237_v30  ;;  %v1547_v37 = vsel %vm1540_vm12, %v1543_v48, %v1546_v59 }
  0xe0   : > { %2544 = vsinq.f32 %v1327_v39  ;;  %vm2374_vm1 = vcmp.lt.s32.totalorder %v2373_v12, 0  ;;  %vm1337_vm13 = vcmp.eq.s32.totalorder %v3342_v11, 2  ;;  %vm1648_vm5 = vcmp.eq.s32.totalorder %v3346_v55, 2 }
  0xe1   : > { %v1413_v29 = vsel %vm2374_vm1, 0, %v2373_v12  ;;  %v1790_v24 = vmul.u32 3, %v1789_v27  ;;  %v3382_v0 = vsel %vm1801_vm14, %v1804_v36, %v1780_v3  ;;  %vm1809_vm6 = vcmp.eq.s32.totalorder %v1806_v57, 0 }
  0xe2   : > { %vm1334_vm7 = vcmp.eq.s32.totalorder %v3342_v11, 0  ;;  %v1414_v42 = vsub.s32 32, %v1413_v29  ;;  %v1415_v26 = vshll.u32 %v3337_v1, %v1413_v29  ;;  %v1418_v8 = vsub.s32 4294967266, %v1413_v29 }
  0xe3   : > { %vm1645_vm8 = vcmp.eq.s32.totalorder %v3346_v55, 0  ;;  %vm1818_vm9 = vcmp.eq.s32.totalorder %v1806_v57, 1  ;;  %vm1333_vm10 = vcmp.lt.s32.totalorder %v3342_v11, 2  ;;  %v1429_v45 = vsel %vm1344_vm11, %v1428_v5, %v3324_v18 }
  0xe4   : > { %v1548_v10 = vsel %vm1228_vm4, nan, %v1547_v37  ;;  %vm1644_vm12 = vcmp.lt.s32.totalorder %v3346_v55, 2  ;;  %vm1827_vm15 = vcmp.eq.s32.totalorder %v1806_v57, 2  ;;  %v1836_v46 = vmul.f32 %v1238_v43, %v3158_v9 }
  0xe5   : > { %vm1331_vm0 = vweird.f32 %v2952_v58  ;;  %v1416_v49 = vshrl.u32 %v1398_v13, %v1414_v42  ;;  %v1419_v31 = vadd.s32 127, %v1418_v8  ;;  %vm1810_vm2 = vcmp.eq.s32.totalorder %v3382_v0, 0 }
  0xe6   : > { %v2620_v56 = vmov 0.0   ;;  %v1839_v4 = vmul.f32 %v1548_v10, %v3158_v9  ;;  %v1842_v15 = vmul.f32 %v1238_v43, %v3110_v51  ;;  %v3405_v1 = vsel %vm3362_vm3, 0, %v1429_v45 }
  0xe7   : > { %v2387_v28 = vsel %vm1809_vm6, 1.0, %v2620_v56  ;;  %v2390_v18 = vsel %vm1818_vm9, 1.0, %v2620_v56  ;;  %v2393_v44 = vsel %vm1827_vm15, 1.0, %v2620_v56  ;;  %v1417_v63 = vor.u32 %v1416_v49, %v1415_v26  ;;  %v3414_v3 = vpop.eup %2540 }
  0xe8   : > { %v1420_v62 = vshll.u32 %v1419_v31, 23  ;;  %v3408_v6 = vsub.s32 %v3317_v40, %v1790_v24  ;;  %v2388_v35 = vsel %vm1810_vm2, 1.0, %v2620_v56  ;;  %vm1819_vm4 = vcmp.eq.s32.totalorder %v3382_v0, 1 }
  0xe9   : > { %v1845_v2 = vmul.f32 %v1548_v10, %v3110_v51  ;;  %v1848_v34 = vmul.f32 %v2387_v28, %v3110_v51  ;;  %v1424_v54 = vcvt.s32.f32 %v1417_v63  ;;  %v1851_v16 = vmul.f32 %v2390_v18, %v1842_v15  ;;  %v2543_v47 = vpop.eup %2542 }
  0xea   : > { %v1421_v33 = vor.u32 4788187, %v1420_v62  ;;  %v1857_v17 = vmul.f32 %v2393_v44, %v1238_v43  ;;  %v1863_v61 = vmul.f32 %v2387_v28, %v1836_v46  ;;  %v3416_v23 = vmul.f32 %v2387_v28, %v1839_v4  ;;  %v2545_v48 = vpop.eup %2544 }
  0xeb   : > { %v1866_v50 = vmul.f32 %v2390_v18, %v1845_v2  ;;  %v1878_v40 = vmul.f32 %v2390_v18, %v3158_v9  ;;  %v1338_v59 = vxor.u32 2147483648, %v2543_v47  ;;  %v2391_v51 = vsel %vm1819_vm4, 1.0, %v2620_v56 }
  0xec   : > { %v1422_v30 = vand.u32 2147483647, %v1421_v33  ;;  %v1854_v14 = vadd.f32 %v1851_v16, %v1848_v34  ;;  %v1335_v27 = vxor.u32 2147483648, %v2545_v48  ;;  %vm1796_vm14 = vcmp.ne.s32.totalorder %v3408_v6, 0 }
  0xed   : > { %vm1828_vm1 = vcmp.eq.s32.totalorder %v3382_v0, 2  ;;  %v3424_v36 = vadd.f32 %v1866_v50, %v1863_v61  ;;  %v1881_v39 = vmul.f32 %v2393_v44, %v1548_v10  ;;  %v1339_v12 = vsel %vm1337_vm13, %v1338_v59, %v2545_v48 }
  0xee   : > { %v1425_v9 = vmul.f32 %v1424_v54, %v1422_v30  ;;  %v1650_v57 = vsel %vm1648_vm5, %v1338_v59, %v2545_v48  ;;  %v3430_v13 = vadd.f32 %v1857_v17, %v1854_v14  ;;  %v1336_v5 = vsel %vm1334_vm7, %v2543_v47, %v1335_v27 }
  0xef   : > { %v1647_v43 = vsel %vm1645_vm8, %v2543_v47, %v1335_v27  ;;  %v1872_v37 = vsub.f32 0.0, %v3424_v36  ;;  %v3437_v29 = vadd.f32 %v1881_v39, %v1878_v40  ;;  %v1340_v24 = vsel %vm1333_vm10, %v1336_v5, %v1339_v12 }
  0xf0   : > { %v1426_v0 = vxor.u32 2147483648, %v1425_v9  ;;  %v1651_v42 = vsel %vm1644_vm12, %v1647_v43, %v1650_v57  ;;  %v2394_v26 = vsel %vm1828_vm1, 1.0, %v2620_v56  ;;  %v1341_v8 = vsel %vm1331_vm0, nan, %v1340_v24 }
  0xf1   : > { %v1652_v45 = vsel %vm1331_vm0, nan, %v1651_v42  ;;  %v1849_v10 = vmul.f32 %v2388_v35, %v3304_v52  ;;  %v1879_v46 = vmul.f32 %v2391_v51, %v3322_v7  ;;  %v1837_v49 = vmul.f32 %v1341_v8, %v3322_v7 }
  0xf2   : > { %v1427_v11 = vsel %vm1344_vm11, %v1426_v0, %v1425_v9  ;;  %v1840_v55 = vmul.f32 %v1652_v45, %v3322_v7  ;;  %v1843_v31 = vmul.f32 %v1341_v8, %v3304_v52  ;;  %v1846_v58 = vmul.f32 %v1652_v45, %v3304_v52 }
  0xf3   : > { %v1430_v28 = vsel %vm3362_vm3, %v3041_v38, %v1427_v11  ;;  %v1858_v18 = vmul.f32 %v2394_v26, %v1341_v8  ;;  %v1882_v44 = vmul.f32 %v2394_v26, %v1652_v45  ;;  %v1864_v15 = vmul.f32 %v2388_v35, %v1837_v49 }
  0xf4   : > { %2546 = vcosq.f32 %v1430_v28  ;;  %v1852_v4 = vmul.f32 %v2391_v51, %v1843_v31  ;;  %v3459_v63 = vmul.f32 %v2388_v35, %v1840_v55  ;;  %vm1799_vm11 = vcmp.lt.s32.totalorder %v3408_v6, 0 }
  0xf5   : > { %2548 = vsinq.f32 %v1430_v28  ;;  %v1867_v62 = vmul.f32 %v2391_v51, %v1846_v58  ;;  %v3462_v7 = vadd.f32 %v1882_v44, %v1879_v46  ;;  %v817_v2 = vxor.u32 2147483648, %v3414_v3  ;;  %vm1802_vm7 = vmand %vm1799_vm11, %vm1796_vm14 }
  0xf6   : > { %v820_v19 = vxor.u32 2147483648, %v3354_v41  ;;  %v1746_v34 = vadd.s32 3, %v3405_v1  ;;  %v1855_v52 = vadd.f32 %v1852_v4, %v1849_v10  ;;  %vm816_vm3 = vcmp.eq.s32.totalorder %v3063_v53, 0 }
  0xf7   : > { %vm819_vm13 = vcmp.eq.s32.totalorder %v3063_v53, 2  ;;  %v1805_v35 = vadd.s32 3, %v3408_v6  ;;  %v3470_v33 = vadd.f32 %v1867_v62, %v1864_v15  ;;  %vm1128_vm5 = vcmp.eq.s32.totalorder %v3065_v60, 0 }
  0xf8   : > { %vm1131_vm6 = vcmp.eq.s32.totalorder %v3065_v60, 2  ;;  %v3476_v54 = vadd.f32 %v1858_v18, %v1855_v52  ;;  %vm815_vm8 = vcmp.lt.s32.totalorder %v3063_v53, 2  ;;  %v818_v17 = vsel %vm816_vm3, %v3354_v41, %v817_v2 }
  0xf9   : > { %v1873_v16 = vsub.f32 0.0, %v3470_v33  ;;  %v821_v47 = vsel %vm819_vm13, %v820_v19, %v3414_v3  ;;  %v1435_v61 = vand.u32 3, %v3405_v1  ;;  %v1747_v50 = vand.u32 3, %v1746_v34 }
  0xfa   : > { %vm1127_vm9 = vcmp.lt.s32.totalorder %v3065_v60, 2  ;;  %v1130_v40 = vsel %vm1128_vm5, %v3354_v41, %v817_v2  ;;  %v1133_v48 = vsel %vm1131_vm6, %v820_v19, %v3414_v3  ;;  %v1808_v59 = vsel %vm1802_vm7, %v1805_v35, %v3408_v6 }
  0xfb   : > { %vm813_vm10 = vweird.f32 %v2780_v32  ;;  %v822_v53 = vsel %vm815_vm8, %v818_v17, %v821_v47  ;;  %v1134_v51 = vsel %vm1127_vm9, %v1130_v40, %v1133_v48  ;;  %vm1440_vm12 = vcmp.eq.s32.totalorder %v1435_v61, 2 }
  0xfc   : > { %vm1752_vm15 = vcmp.eq.s32.totalorder %v1747_v50, 2  ;;  %vm1811_vm0 = vcmp.eq.s32.totalorder %v1808_v59, 0  ;;  %vm1436_vm2 = vcmp.lt.s32.totalorder %v1435_v61, 2  ;;  %vm1437_vm4 = vcmp.eq.s32.totalorder %v1435_v61, 0 }
  0xfd   : > { %vm1749_vm14 = vcmp.eq.s32.totalorder %v1747_v50, 0  ;;  %vm1748_vm1 = vcmp.lt.s32.totalorder %v1747_v50, 2  ;;  %vm1820_vm11 = vcmp.eq.s32.totalorder %v1808_v59, 1  ;;  %vm1829_vm3 = vcmp.eq.s32.totalorder %v1808_v59, 2 }
  0xfe   : > { %v2547_v30 = vpop.eup %2546  ;;  %vm1434_vm13 = vweird.f32 %v3041_v38  ;;  %v2389_v3 = vsel %vm1811_vm0, 1.0, %v2620_v56  ;;  %v823_v27 = vsel %vm813_vm10, nan, %v822_v53  ;;  %v1135_v39 = vsel %vm813_vm10, nan, %v1134_v51 }
  0xff   : > { %v2549_v14 = vpop.eup %2548  ;;  %v1441_v1 = vxor.u32 2147483648, %v2547_v30  ;;  %v2392_v43 = vsel %vm1820_vm11, 1.0, %v2620_v56  ;;  %v2395_v24 = vsel %vm1829_vm3, 1.0, %v2620_v56  ;;  %v1850_v42 = vmul.f32 %v2389_v3, %v823_v27 }
 0x100   : > { %v1438_v60 = vxor.u32 2147483648, %v2549_v14  ;;  %v1880_v26 = vmul.f32 %v2392_v43, %v1135_v39 }
 0x101   : > { %v1442_v41 = vsel %vm1440_vm12, %v1441_v1, %v2549_v14  ;;  %v1754_v6 = vsel %vm1752_vm15, %v1441_v1, %v2549_v14 }
 0x102   : > { %v1439_v12 = vsel %vm1437_vm4, %v2547_v30, %v1438_v60  ;;  %v1751_v9 = vsel %vm1749_vm14, %v2547_v30, %v1438_v60 }
 0x103   : > { %v1443_v57 = vsel %vm1436_vm2, %v1439_v12, %v1442_v41  ;;  %v1755_v5 = vsel %vm1748_vm1, %v1751_v9, %v1754_v6 }
 0x104   : > { %v1444_v38 = vsel %vm1434_vm13, nan, %v1443_v57  ;;  %v1756_v0 = vsel %vm1434_vm13, nan, %v1755_v5 }
 0x105   : > { %v1838_v8 = vmul.f32 %v1444_v38, %v1135_v39  ;;  %v1841_v45 = vmul.f32 %v1756_v0, %v1135_v39  ;;  %v1844_v32 = vmul.f32 %v1444_v38, %v823_v27  ;;  %v1847_v10 = vmul.f32 %v1756_v0, %v823_v27 }
 0x106   : > { %v1859_v46 = vmul.f32 %v2395_v24, %v1444_v38  ;;  %v1883_v11 = vmul.f32 %v2395_v24, %v1756_v0 }
 0x107   : > { %v1853_v49 = vmul.f32 %v2392_v43, %v1844_v32  ;;  %v1865_v55 = vmul.f32 %v2389_v3, %v1838_v8  ;;  %v1868_v31 = vmul.f32 %v2392_v43, %v1847_v10  ;;  %v3497_v28 = vmul.f32 %v2389_v3, %v1841_v45 }
 0x108   : > { %v3499_v56 = vadd.f32 %v1883_v11, %v1880_v26 }
 0x109   : > { %v1856_v58 = vadd.f32 %v1853_v49, %v1850_v42  ;;  %v3501_v18 = vadd.f32 %v1868_v31, %v1865_v55 }
 0x10b   : > { %v3503_v44 = vadd.f32 %v1859_v46, %v1856_v58  ;;  %v1874_v4 = vsub.f32 0.0, %v3501_v18 }
 0x10c LB: >> { %s3520_s17 = smul.u32 24, %s2612_s16  ;;  %s2621_s19 = smov 127   ;;  %vm1928_vm5 = vcmp.lt.s32.totalorder %v3221_v25, 127  ;;  %vm1938_vm6 = vcmp.lt.s32.totalorder %v3221_v25, 126  ;;  %vm1948_vm7 = vcmp.lt.s32.totalorder %v3221_v25, 1  ;;  %s2612_s16 = sphi %s3514_s16, %s1892_s16  }
 0x10d   : >> { %s2622_s30 = smov 126   ;;  %s2623_s8 = smov 1  }
 0x10e   : >> { %s1913_s21 = scalar_lea.vmem %s385_s11, %s3520_s17 [#allocation2]  ;;  %s1918_s18 = scalar_lea.vmem %s392_s12, %s3520_s17 [#allocation3] }
 0x10f   : >> { %v1916_v15 = vld [vmem:[%s1913_s21 + $0x10] sm:$0xff]  ;;  %v1914_v62 = vld [vmem:[%s1913_s21] sm:$0xff]  ;;  %v1915_v19 = vld [vmem:[%s1913_s21 + $0x8] sm:$0xff]  ;;  %s1893_s10 = smul.u32 3, %s2612_s16  ;;  %s1892_s16 = sadd.s32 1, %s2612_s16  }
 0x110   : >> { %1926 = vrot.lane.b32.xlu1 %v1916_v15, %s2621_s19  ;;  %1922 = vrot.lane.b32.xlu0 %v1914_v62, %s2621_s19  ;;  %v1919_v2 = vld [vmem:[%s1918_s18] sm:$0xff]  ;;  %v1921_v34 = vld [vmem:[%s1918_s18 + $0x10] sm:$0xff]  ;;  %v1954_v14 = vmul.f32 %v1916_v15, %v3503_v44  ;;  %v1952_v1 = vmul.f32 %v1914_v62, %v3430_v13  ;;  %v1953_v3 = vmul.f32 %v1915_v19, %v3476_v54  ;;  %p1889_p0 = scmp.ge.s32.totalorder %s1892_s16, 3  }
 0x111   : >> { %v1920_v52 = vld [vmem:[%s1918_s18 + $0x8] sm:$0xff]  ;;  %s1894_s21 = scalar_lea.vmem %s2762_s20, %s1893_s10  ;;  %v2010_v57 = vmul.f32 %v1921_v34, %v3503_v44  ;;  %v2008_v5 = vmul.f32 %v1919_v2, %v3430_v13  ;;  %s1977_s18 = scalar_lea.vmem %s3509_s14, %s3520_s17 [#allocation4] }
 0x112   : >> { %v1895_v41 = vld [vmem:[%s1894_s21] sm:$0x7]  ;;  %v2009_v43 = vmul.f32 %v1920_v52, %v3476_v54 }
 0x113   : >> { %v3555_v42 = vrot.slane %v1895_v41, %v2755_v21  ;;  %v1900_v32 = vrot.slane %v1895_v41, %v2753_v20 }
 0x114   : >> { %1981 = vrot.lane.b32.xlu1 %v1919_v2, %s2621_s19  ;;  %1924 = vrot.lane.b32.xlu0 %v1915_v19, %s2621_s19 }
 0x118   : >> { %1985 = vrot.lane.b32.xlu1 %v1921_v34, %s2621_s19  ;;  %1983 = vrot.lane.b32.xlu0 %v1920_v52, %s2621_s19  ;;  %s2033_s19 = scalar_lea.vmem %s3512_s15, %s3520_s17 [#allocation5] }
 0x11c   : >> { %1934 = vrot.lane.b32.xlu1 %v1915_v19, %s2622_s30  ;;  %1932 = vrot.lane.b32.xlu0 %v1914_v62, %s2622_s30 }
 0x120   : >> { %1990 = vrot.lane.b32.xlu1 %v1919_v2, %s2622_s30  ;;  %1936 = vrot.lane.b32.xlu0 %v1916_v15, %s2622_s30 }
 0x124   : >> { %1994 = vrot.lane.b32.xlu1 %v1921_v34, %s2622_s30  ;;  %1992 = vrot.lane.b32.xlu0 %v1920_v52, %s2622_s30 }
 0x128   : >> { %1944 = vrot.lane.b32.xlu1 %v1915_v19, %s2623_s8  ;;  %1942 = vrot.lane.b32.xlu0 %v1914_v62, %s2623_s8 }
 0x12c   : >> { %1999 = vrot.lane.b32.xlu1 %v1919_v2, %s2623_s8  ;;  %1946 = vrot.lane.b32.xlu0 %v1916_v15, %s2623_s8  ;;  %v1908_v2 = vrot.slane %v1895_v41, %v2757_v22 }
 0x130   : >> { %2003 = vrot.lane.b32.xlu1 %v1921_v34, %s2623_s8  ;;  %2001 = vrot.lane.b32.xlu0 %v1920_v52, %s2623_s8 }
 0x182   : >> { %v1927_v35 = vpop.permute.xlu1 %1926  ;;  %v1923_v17 = vpop.permute.xlu0 %1922 }
 0x183   : >> { %v1931_v6 = vsel %vm1928_vm5, %v1927_v35, %v1923_v17 }
 0x184   : >> { %v1957_v26 = vmul.f32 %v1931_v6, %v1874_v4 }
 0x186   : >> { %v1982_v47 = vpop.permute.xlu1 %1981  ;;  %v1925_v61 = vpop.permute.xlu0 %1924 }
 0x187   : >> { %v1929_v51 = vsel %vm1928_vm5, %v1925_v61, %v1927_v35  ;;  %v1930_v27 = vsel %vm1928_vm5, %v1923_v17, %v1925_v61  ;;  %v1960_v17 = vadd.f32 %v1957_v26, %v1954_v14 }
 0x188   : >> { %v1956_v39 = vmul.f32 %v1929_v51, %v1873_v16  ;;  %v1955_v8 = vmul.f32 %v1930_v27, %v1872_v37 }
 0x18a   : >> { %v1986_v50 = vpop.permute.xlu1 %1985  ;;  %v1984_v40 = vpop.permute.xlu0 %1983  ;;  %v1959_v10 = vadd.f32 %v1956_v39, %v1953_v3 }
 0x18b   : >> { %v1988_v24 = vsel %vm1928_vm5, %v1982_v47, %v1984_v40  ;;  %v1989_v46 = vsel %vm1928_vm5, %v1986_v50, %v1982_v47  ;;  %v1987_v11 = vsel %vm1928_vm5, %v1984_v40, %v1986_v50  ;;  %v1958_v47 = vadd.f32 %v1955_v8, %v1952_v1 }
 0x18c   : >> { %v2011_v49 = vmul.f32 %v1988_v24, %v1872_v37  ;;  %v2013_v61 = vmul.f32 %v1989_v46, %v1874_v4  ;;  %v2012_v50 = vmul.f32 %v1987_v11, %v1873_v16 }
 0x18e   : >> { %v1935_v48 = vpop.permute.xlu1 %1934  ;;  %v1933_v59 = vpop.permute.xlu0 %1932  ;;  %v2014_v40 = vadd.f32 %v2011_v49, %v2008_v5  ;;  %v2016_v5 = vadd.f32 %v2013_v61, %v2010_v57 }
 0x18f   : >> { %v1940_v38 = vsel %vm1938_vm6, %v1933_v59, %v1935_v48 }
 0x190   : >> { %v1961_v58 = vmul.f32 %v1940_v38, %v3416_v23 }
 0x192   : >> { %v1991_v53 = vpop.permute.xlu1 %1990  ;;  %v1937_v30 = vpop.permute.xlu0 %1936  ;;  %v1964_v41 = vadd.f32 %v1961_v58, %v1958_v47 }
 0x193   : >> { %v1939_v60 = vsel %vm1938_vm6, %v1935_v48, %v1937_v30  ;;  %v1941_v45 = vsel %vm1938_vm6, %v1937_v30, %v1933_v59 }
 0x194   : >> { %v1962_v0 = vmul.f32 %v1939_v60, %v3459_v63  ;;  %v1963_v19 = vmul.f32 %v1941_v45, %v3497_v28 }
 0x196   : >> { %v1995_v12 = vpop.permute.xlu1 %1994  ;;  %v1993_v9 = vpop.permute.xlu0 %1992  ;;  %v1965_v34 = vadd.f32 %v1962_v0, %v1959_v10  ;;  %v1966_v3 = vadd.f32 %v1963_v19, %v1960_v17 }
 0x197   : >> { %v1997_v15 = vsel %vm1938_vm6, %v1991_v53, %v1993_v9  ;;  %v1996_v52 = vsel %vm1938_vm6, %v1993_v9, %v1995_v12  ;;  %v1998_v48 = vsel %vm1938_vm6, %v1995_v12, %v1991_v53  ;;  %v2015_v12 = vadd.f32 %v2012_v50, %v2009_v43 }
 0x198   : >> { %v2017_v59 = vmul.f32 %v1997_v15, %v3416_v23  ;;  %v2018_v6 = vmul.f32 %v1996_v52, %v3459_v63  ;;  %v2019_v9 = vmul.f32 %v1998_v48, %v3497_v28 }
 0x19a   : >> { %v1945_v55 = vpop.permute.xlu1 %1944  ;;  %v1943_v31 = vpop.permute.xlu0 %1942  ;;  %v2020_v24 = vadd.f32 %v2017_v59, %v2014_v40  ;;  %v2021_v45 = vadd.f32 %v2018_v6, %v2015_v12 }
 0x19b   : >> { %v1950_v62 = vsel %vm1948_vm7, %v1943_v31, %v1945_v55 }
 0x19c   : >> { %v1968_v35 = vmul.f32 %v1950_v62, %v3462_v7 }
 0x19e   : >> { %v1971_v30 = vadd.f32 %v1968_v35, %v1965_v34  ;;  %v2000_v51 = vpop.permute.xlu1 %1999  ;;  %v1947_v60 = vpop.permute.xlu0 %1946 }
 0x19f   : >> { %v1949_v14 = vsel %vm1948_vm7, %v1945_v55, %v1947_v60  ;;  %v1951_v1 = vsel %vm1948_vm7, %v1947_v60, %v1943_v31  ;;  %v2022_v31 = vadd.f32 %v2019_v9, %v2016_v5 }
 0x1a0   : >> { %v1974_v27 = vadd.f32 %v1971_v30, %v3555_v42  ;;  %v1967_v53 = vmul.f32 %v1951_v1, %v3437_v29  ;;  %v1969_v39 = vmul.f32 %v1949_v14, %v3499_v56 }
 0x1a2   : >> { %1979 = vst [vmem:[%s1977_s18 + $0x8] sm:$0xff] %v1974_v27  ;;  %v1970_v38 = vadd.f32 %v1967_v53, %v1964_v41  ;;  %v1972_v0 = vadd.f32 %v1969_v39, %v1966_v3  ;;  %v2004_v26 = vpop.permute.xlu1 %2003  ;;  %v2002_v8 = vpop.permute.xlu0 %2001 }
 0x1a3   : >> { %v2007_v10 = vsel %vm1948_vm7, %v2004_v26, %v2000_v51  ;;  %v2005_v46 = vsel %vm1948_vm7, %v2002_v8, %v2004_v26  ;;  %v2006_v43 = vsel %vm1948_vm7, %v2000_v51, %v2002_v8 }
 0x1a4   : >> { %v1973_v11 = vadd.f32 %v1970_v38, %v1900_v32  ;;  %v1975_v57 = vadd.f32 %v1972_v0, %v1908_v2  ;;  %v2023_v49 = vmul.f32 %v2007_v10, %v3437_v29  ;;  %v2024_v55 = vmul.f32 %v2006_v43, %v3462_v7 }
 0x1a5   : >> { %v2025_v58 = vmul.f32 %v2005_v46, %v3499_v56  ;;  %1891 = sbr.rel (!%p1889_p0) target bundleno = 268 (0x10c), region = 210 }
 0x1a6   : >> { %1978 = vst [vmem:[%s1977_s18] sm:$0xff] %v1973_v11  ;;  %1980 = vst [vmem:[%s1977_s18 + $0x10] sm:$0xff] %v1975_v57  ;;  %v2026_v15 = vadd.f32 %v2023_v49, %v2020_v24  ;;  %v2027_v62 = vadd.f32 %v2024_v55, %v2021_v45 }
 0x1a7   : >> { %v2028_v19 = vadd.f32 %v2025_v58, %v2022_v31 }
 0x1a8   : >> { %v2029_v34 = vadd.f32 %v2026_v15, %v1900_v32  ;;  %v2030_v52 = vadd.f32 %v2027_v62, %v3555_v42 }
 0x1a9   : >> { %v2031_v35 = vadd.f32 %v2028_v19, %v1908_v2 }
 0x1aa   : >> { %2034 = vst [vmem:[%s2033_s19] sm:$0xff] %v2029_v34  ;;  %2035 = vst [vmem:[%s2033_s19 + $0x8] sm:$0xff] %v2030_v52 }
 0x1ab   : >> { %2036 = vst [vmem:[%s2033_s19 + $0x10] sm:$0xff] %v2031_v35 }
 0x1ac   : > { %2047 = sbr.rel (!%p2711_p6) target bundleno = 440 (0x1b8), region = 97 }
 0x1ad   : > { %s2448_s17 = smul.u32 (%p2711_p6), 3, %s2592_s23  ;;  %v2068_v42 = vld [vmem:[%s3509_s14] sm:$0xff] (%p2711_p6)  ;;  %v2070_v32 = vld [vmem:[%s3509_s14 + $0x8] sm:$0xff] (%p2711_p6)  ;;  %v2072_v2 = vld [vmem:[%s3509_s14 + $0x10] sm:$0xff] (%p2711_p6) }
 0x1ae   : > { %s2449_s30 = smul.u32 (%p2711_p6), 18, %s2596_s24  ;;  %v2074_v17 = vld [vmem:[%s3509_s14 + $0x18] sm:$0xff] (%p2711_p6)  ;;  %v2076_v20 = vld [vmem:[%s3509_s14 + $0x20] sm:$0xff] (%p2711_p6)  ;;  %v2078_v21 = vld [vmem:[%s3509_s14 + $0x28] sm:$0xff] (%p2711_p6) }
 0x1af   : > { %v2080_v22 = vld [vmem:[%s3509_s14 + $0x30] sm:$0xff] (%p2711_p6)  ;;  %v2082_v25 = vld [vmem:[%s3509_s14 + $0x38] sm:$0xff] (%p2711_p6)  ;;  %v2084_v23 = vld [vmem:[%s3509_s14 + $0x40] sm:$0xff] (%p2711_p6) }
 0x1b0   : > { %s2053_s7 = sadd.s32 (%p2711_p6), %s2449_s30, %s2448_s17 }
 0x1b1   : > { %s2400_s20 = sshll.u32 (%p2711_p6), %s2053_s7, 3 }
 0x1b2   : > { %s2055_s16 = scalar_lea.vmem (%p2711_p6), %s3671_s5, %s2400_s20 }
 0x1b3   : > { %2069 = vst [vmem:[%s2055_s16] sm:$0xff] %v2068_v42  ;;  %2071 = vst [vmem:[%s2055_s16 + $0x8] sm:$0xff] %v2070_v32 }
 0x1b4   : > { %2073 = vst [vmem:[%s2055_s16 + $0x10] sm:$0xff] %v2072_v2  ;;  %2075 = vst [vmem:[%s2055_s16 + $0x30] sm:$0xff] %v2074_v17 }
 0x1b5   : > { %2077 = vst [vmem:[%s2055_s16 + $0x38] sm:$0xff] %v2076_v20  ;;  %2079 = vst [vmem:[%s2055_s16 + $0x40] sm:$0xff] %v2078_v21 }
 0x1b6   : > { %2081 = vst [vmem:[%s2055_s16 + $0x60] sm:$0xff] %v2080_v22  ;;  %2083 = vst [vmem:[%s2055_s16 + $0x68] sm:$0xff] %v2082_v25 }
 0x1b7   : > { %2085 = vst [vmem:[%s2055_s16 + $0x70] sm:$0xff] %v2084_v23 }
 0x1b8 PF: > { %2091 = sbr.rel (!%p2711_p6) target bundleno = 452 (0x1c4), region = 120  ;;  %v2112_v36 = vld [vmem:[%s3512_s15] sm:$0xff] (%p2711_p6)  ;;  %v2114_v13 = vld [vmem:[%s3512_s15 + $0x8] sm:$0xff] (%p2711_p6)  ;;  %v2116_v37 = vld [vmem:[%s3512_s15 + $0x10] sm:$0xff] (%p2711_p6) }
 0x1b9   : > { %s2450_s14 = smul.u32 (%p2711_p6), 3, %s2592_s23  ;;  %v2118_v29 = vld [vmem:[%s3512_s15 + $0x18] sm:$0xff] (%p2711_p6)  ;;  %v2120_v63 = vld [vmem:[%s3512_s15 + $0x20] sm:$0xff] (%p2711_p6)  ;;  %v2122_v7 = vld [vmem:[%s3512_s15 + $0x28] sm:$0xff] (%p2711_p6) }
 0x1ba   : > { %s2451_s8 = smul.u32 (%p2711_p6), 18, %s2596_s24  ;;  %v2124_v33 = vld [vmem:[%s3512_s15 + $0x30] sm:$0xff] (%p2711_p6)  ;;  %v2126_v54 = vld [vmem:[%s3512_s15 + $0x38] sm:$0xff] (%p2711_p6)  ;;  %v2128_v16 = vld [vmem:[%s3512_s15 + $0x40] sm:$0xff] (%p2711_p6) }
 0x1bc   : > { %s2097_s9 = sadd.s32 (%p2711_p6), %s2451_s8, %s2450_s14 }
 0x1bd   : > { %s2401_s10 = sshll.u32 (%p2711_p6), %s2097_s9, 3 }
 0x1be   : > { %s2099_s19 = scalar_lea.vmem (%p2711_p6), %s3672_s6, %s2401_s10 }
 0x1bf   : > { %2113 = vst [vmem:[%s2099_s19] sm:$0xff] %v2112_v36  ;;  %2115 = vst [vmem:[%s2099_s19 + $0x8] sm:$0xff] %v2114_v13 }
 0x1c0   : > { %2117 = vst [vmem:[%s2099_s19 + $0x10] sm:$0xff] %v2116_v37  ;;  %2119 = vst [vmem:[%s2099_s19 + $0x30] sm:$0xff] %v2118_v29 }
 0x1c1   : > { %2121 = vst [vmem:[%s2099_s19 + $0x38] sm:$0xff] %v2120_v63  ;;  %2123 = vst [vmem:[%s2099_s19 + $0x40] sm:$0xff] %v2122_v7 }
 0x1c2   : > { %2125 = vst [vmem:[%s2099_s19 + $0x60] sm:$0xff] %v2124_v33  ;;  %2127 = vst [vmem:[%s2099_s19 + $0x68] sm:$0xff] %v2126_v54 }
 0x1c3   : > { %2129 = vst [vmem:[%s2099_s19 + $0x70] sm:$0xff] %v2128_v16 }
 0x1c4 PF: > { %s17_s27 = sadd.s32 1, %s2608_s27   ;;  %s3689_s21 = smov %s2588_s22 }
 0x1c5   : > { %p14_p1 = scmp.ge.s32.totalorder %s17_s27, 6   ;;  %s3690_s22 = smov %s2719_s13 }
 0x1c6   : > { %s3691_s23 = smov %s2600_s25  ;;  %s3692_s24 = smov %s2604_s26 }
 0x1c7   : > { %s3693_s25 = smov %s3696_s28  ;;  %s3694_s26 = smov %s3700_s29 }
 0x1c8   :  { %16 = sbr.rel (!%p14_p1) target bundleno = 4 (0x4), region = 221 }

</bundles_post_ra>
